<compile_context>
chip_gen: v5e
topology: v5e:2x2
jax: 0.10.0
libtpu: 0.0.40
codegen_flags: <defaults>
</compile_context>

<pallas_src>
import numpy as np
import jax
import jax.numpy as jnp
from jax import lax
from jax.experimental import pallas as pl
from jax.experimental.pallas import tpu as pltpu

# --------------------------- module constants --------------------------------
CIN = 5                      # input channels (obs viewed as (B, 5, 11, 11))
IMG = 11                     # spatial size
CNN = 32                     # cnn_channels
HIDDEN = 128                 # hidden_size
N_ACTIONS = 4                # env.single_action_space.n (TrashPickup: 4 moves)

K1, S1 = 5, 3                # conv1 kernel / stride
K2 = 3                       # conv2 kernel
OUT_HW = (IMG - K1) // S1 + 1            # 3
N_PATCH = OUT_HW * OUT_HW                # 9
OBS_FLAT = CIN * IMG * IMG               # 605
CONV1_FLAT = CNN * N_PATCH               # 288 (NCHW-flattened conv1 output)
PAD = 128                                # lane-dense width for conv2/encoder/head
TB_MAX = 512                             # max batch tile (sweepable)


# --------------------------------- kernel ------------------------------------
def trash_pickup_kernel(obs_ref, w1_ref, b1_ref, w2_ref, b2_ref,
                        we_ref, be_ref, wh_ref, bh_ref, out_ref):
    f32, bf16 = jnp.float32, jnp.bfloat16

    # Obs arrives in its narrowest (int) dtype; cast to bf16 in-kernel --
    # cheap VPU work hidden under the obs DMA / MXU.
    x = obs_ref[...].astype(f32).astype(bf16)                          # (TB, 605)

    # conv1 (5x5, stride 3) folded into one bf16 MXU matmul + bias + ReLU.
    h1 = jnp.maximum(
        jnp.dot(x, w1_ref[...], preferred_element_type=f32)
        + b1_ref[...], 0.0)                                            # (TB, 288)

    # conv2 (3x3 on the 3x3 map -> 1x1) == dense over the NCHW conv1 flatten,
    # zero-padded to 128 output lanes so every op is full-vreg / unmasked.
    h2 = jnp.maximum(
        jnp.dot(h1.astype(bf16), w2_ref[...], preferred_element_type=f32)
        + b2_ref[...], 0.0)                                            # (TB, 128)

    # encoder Linear (the reference Sequential has no activation after it).
    hidden = (jnp.dot(h2.astype(bf16), we_ref[...], preferred_element_type=f32)
              + be_ref[...])                                           # (TB, 128)

    # merged actor|value head -> single unmasked 128-lane bf16 store.
    out_ref[...] = (jnp.dot(hidden.astype(bf16), wh_ref[...],
                            preferred_element_type=f32)
                    + bh_ref[...]).astype(out_ref.dtype)               # (TB, 128)


# ----------------------- parameter preparation (glue) -------------------------
def _pack_params(raw):
    """Map PyTorch-layout weights to the kernel's fused dense matrices."""
    w1 = np.asarray(raw["w1"], np.float32)        # (Cout, Cin, 5, 5)
    b1 = np.asarray(raw["b1"], np.float32)        # (Cout,)

    # Expanded conv1: W1e[ci*121 + iy*11 + ix, co*9 + p] = w1[co, ci, ky, kx]
    # with p = oy*3 + ox, iy = oy*3 + ky, ix = ox*3 + kx  (channel-major cols).
    w1e = np.zeros((OBS_FLAT, CONV1_FLAT), np.float32)
    for oy in range(OUT_HW):
        for ox in range(OUT_HW):
            p = oy * OUT_HW + ox
            cols = np.arange(CNN) * N_PATCH + p
            for ci in range(CIN):
                for ky in range(K1):
                    iy = oy * S1 + ky
                    rows = ci * IMG * IMG + iy * IMG + ox * S1 + np.arange(K1)
                    w1e[np.ix_(rows, cols)] = w1[:, ci, ky, :].T
    b1e = np.repeat(b1, N_PATCH).reshape(1, CONV1_FLAT)   # bias per (co, p) column

    # conv2 as dense over the NCHW-flattened conv1 output, padded to 128 lanes.
    w2 = np.asarray(raw["w2"], np.float32)        # (Cout, Cin, 3, 3)
    w2d = np.transpose(w2, (1, 2, 3, 0)).reshape(CONV1_FLAT, CNN)
    w2p = np.zeros((CONV1_FLAT, PAD), np.float32)
    w2p[:, :CNN] = w2d
    b2p = np.zeros((1, PAD), np.float32)
    b2p[0, :CNN] = np.asarray(raw["b2"], np.float32)

    # encoder Linear, input dim padded 32 -> 128 (extra rows hit zero h2 lanes).
    we = np.asarray(raw["we"], np.float32).T      # (32, 128)
    wep = np.zeros((PAD, HIDDEN), np.float32)
    wep[:CNN, :] = we

    # merged actor|value head, zero-padded to 128 output lanes.
    wa = np.asarray(raw["wa"], np.float32).T      # (128, N_ACTIONS)
    wc = np.asarray(raw["wc"], np.float32).T      # (128, 1)
    wh = np.zeros((HIDDEN, PAD), np.float32)
    wh[:, :N_ACTIONS] = wa
    wh[:, N_ACTIONS:N_ACTIONS + 1] = wc
    bh = np.zeros((1, PAD), np.float32)
    bh[0, :N_ACTIONS] = np.asarray(raw["ba"], np.float32)
    bh[0, N_ACTIONS] = np.asarray(raw["bc"], np.float32)[0]

    return dict(
        w1e=jnp.asarray(w1e, jnp.bfloat16),
        b1e=jnp.asarray(b1e, jnp.float32),
        w2p=jnp.asarray(w2p, jnp.bfloat16),
        b2p=jnp.asarray(b2p, jnp.float32),
        wep=jnp.asarray(wep, jnp.bfloat16),
        be=jnp.asarray(raw["be"], jnp.float32).reshape(1, HIDDEN),
        wh=jnp.asarray(wh, jnp.bfloat16),
        bh=jnp.asarray(bh, jnp.float32),
    )


def init_params(key):
    ks = jax.random.split(key, 8)
    n = lambda k, s: jax.random.normal(k, s, jnp.float32)
    raw = dict(
        w1=0.1 * n(ks[0], (CNN, CIN, K1, K1)),
        b1=0.05 * n(ks[1], (CNN,)),
        w2=0.1 * n(ks[2], (CNN, CNN, K2, K2)),
        b2=0.05 * n(ks[3], (CNN,)),
        we=0.1 * n(ks[4], (HIDDEN, CNN)),          # Linear(32, 128).weight layout
        be=0.05 * n(ks[5], (HIDDEN,)),
        wa=0.01 * n(ks[6], (N_ACTIONS, HIDDEN)),   # actor.weight layout
        ba=jnp.zeros((N_ACTIONS,), jnp.float32),
        wc=0.1 * n(ks[7], (1, HIDDEN)),            # value_fn.weight layout
        bc=jnp.zeros((1,), jnp.float32),
    )
    return raw, _pack_params(raw)


# ------------------------------- forward wrapper ------------------------------
def _round_up(x, m):
    return ((x + m - 1) // m) * m


def _choose_tb(batch):
    # Big tiles amortize the ~0.35us per-grid-step overhead, but cap so the
    # "parallel" grid keeps >= 2 steps (shards across both v7x TensorCores).
    tb = min(TB_MAX, _round_up((batch + 1) // 2, 32))
    return max(tb, 32)


def trash_pickup_forward(obs, kparams):
    """obs: (B, 5, 11, 11) in any dtype (the module does .float())."""
    B = obs.shape[0]
    x = obs.reshape(B, OBS_FLAT)          # contiguous reshape; keep narrowest dtype

    tb = _choose_tb(B)
    Bp = _round_up(B, tb)
    if Bp != B:
        x = jnp.pad(x, ((0, Bp - B), (0, 0)))

    const2d = lambda shape: pl.BlockSpec(shape, lambda i: (0, 0))
    out = pl.pallas_call(
        trash_pickup_kernel,
        out_shape=jax.ShapeDtypeStruct((Bp, PAD), jnp.bfloat16),
        grid_spec=pltpu.PrefetchScalarGridSpec(
            num_scalar_prefetch=0,
            grid=(Bp // tb,),
            in_specs=[
                pl.BlockSpec((tb, OBS_FLAT), lambda i: (i, 0)),   # obs tile (int dtype)
                const2d((OBS_FLAT, CONV1_FLAT)),                  # conv1 expanded (bf16)
                const2d((1, CONV1_FLAT)),                         # conv1 bias
                const2d((CONV1_FLAT, PAD)),                       # conv2 dense (bf16)
                const2d((1, PAD)),                                # conv2 bias (padded)
                const2d((PAD, HIDDEN)),                           # encoder W (bf16)
                const2d((1, HIDDEN)),                             # encoder b
                const2d((HIDDEN, PAD)),                           # actor|value W (bf16)
                const2d((1, PAD)),                                # actor|value b
            ],
            out_specs=pl.BlockSpec((tb, PAD), lambda i: (i, 0)),
        ),
        compiler_params=pltpu.CompilerParams(
            dimension_semantics=("parallel",)),
    )(x, kparams["w1e"], kparams["b1e"], kparams["w2p"], kparams["b2p"],
      kparams["wep"], kparams["be"], kparams["wh"], kparams["bh"])

    out = out[:B].astype(jnp.float32)
    logits = out[:, :N_ACTIONS]                    # actor logits (Discrete head)
    value = out[:, N_ACTIONS:N_ACTIONS + 1]        # critic value
    return logits, value


# ----------------------------- pure-JAX reference ------------------------------
def reference_forward(obs, raw):
    x = obs.astype(jnp.float32)                                       # NCHW
    dn = ("NCHW", "OIHW", "NCHW")
    y = lax.conv_general_dilated(x, raw["w1"], (S1, S1), "VALID",
                                 dimension_numbers=dn)
    y = jnp.maximum(y + raw["b1"][None, :, None, None], 0.0)
    y = lax.conv_general_dilated(y, raw["w2"], (1, 1), "VALID",
                                 dimension_numbers=dn)
    y = jnp.maximum(y + raw["b2"][None, :, None, None], 0.0)
    flat = y.reshape(x.shape[0], -1)                                  # (B, 32)
    hidden = flat @ raw["we"].T + raw["be"]
    logits = hidden @ raw["wa"].T + raw["ba"]
    value = hidden @ raw["wc"].T + raw["bc"]
    return logits, value


# ----------------------------------- main --------------------------------------
if __name__ == "__main__":
    key = jax.random.PRNGKey(0)
    pkey, okey = jax.random.split(key)
    raw_params, kernel_params = init_params(pkey)

    B = 256   # -> TB=128, grid of 2 (keeps both v7x TensorCores busy)
    obs = jax.random.randint(okey, (B, CIN, IMG, IMG), 0, 5).astype(jnp.int8)

    fwd = jax.jit(trash_pickup_forward)
    logits, value = fwd(obs, kernel_params)
    logits, value = jax.block_until_ready((logits, value))

    assert logits.shape == (B, N_ACTIONS)
    assert value.shape == (B, 1)
    assert bool(jnp.all(jnp.isfinite(logits))) and bool(jnp.all(jnp.isfinite(value)))

    ref_logits, ref_value = reference_forward(obs, raw_params)
    np.testing.assert_allclose(np.asarray(logits), np.asarray(ref_logits),
                               rtol=5e-2, atol=5e-2)
    np.testing.assert_allclose(np.asarray(value), np.asarray(ref_value),
                               rtol=5e-2, atol=5e-2)

    print("KERNEL_OK")
</pallas_src>

<mosaic_0001>
module attributes {stable_mosaic.version = 11 : i64} {
  func.func @trash_pickup_kernel(%arg0: i32, %arg1: memref<128x605xi8, #tpu.memory_space<vmem>>, %arg2: memref<605x288xbf16, #tpu.memory_space<vmem>>, %arg3: memref<1x288xf32, #tpu.memory_space<vmem>>, %arg4: memref<288x128xbf16, #tpu.memory_space<vmem>>, %arg5: memref<1x128xf32, #tpu.memory_space<vmem>>, %arg6: memref<128x128xbf16, #tpu.memory_space<vmem>>, %arg7: memref<1x128xf32, #tpu.memory_space<vmem>>, %arg8: memref<128x128xbf16, #tpu.memory_space<vmem>>, %arg9: memref<1x128xf32, #tpu.memory_space<vmem>>, %arg10: memref<128x128xbf16, #tpu.memory_space<vmem>>) attributes {dimension_semantics = [#tpu.dimension_semantics<parallel>], iteration_bounds = array<i64: 2>, scalar_prefetch = 0 : i64, scratch_operands = 0 : i64, tpu.core_type = #tpu.core_type<tc>, window_params = [{transform_indices = @transform_0, window_bounds = array<i64: 128, 605>}, {pipeline_mode = #tpu.pipeline_mode<synchronous>, transform_indices = @transform_1, window_bounds = array<i64: 605, 288>}, {pipeline_mode = #tpu.pipeline_mode<synchronous>, transform_indices = @transform_2, window_bounds = array<i64: 1, 288>}, {pipeline_mode = #tpu.pipeline_mode<synchronous>, transform_indices = @transform_3, window_bounds = array<i64: 288, 128>}, {pipeline_mode = #tpu.pipeline_mode<synchronous>, transform_indices = @transform_4, window_bounds = array<i64: 1, 128>}, {pipeline_mode = #tpu.pipeline_mode<synchronous>, transform_indices = @transform_5, window_bounds = array<i64: 128, 128>}, {pipeline_mode = #tpu.pipeline_mode<synchronous>, transform_indices = @transform_6, window_bounds = array<i64: 1, 128>}, {pipeline_mode = #tpu.pipeline_mode<synchronous>, transform_indices = @transform_7, window_bounds = array<i64: 128, 128>}, {pipeline_mode = #tpu.pipeline_mode<synchronous>, transform_indices = @transform_8, window_bounds = array<i64: 1, 128>}, {transform_indices = @transform_9, window_bounds = array<i64: 128, 128>}]} {
    %c0 = arith.constant 0 : index
    %c0_0 = arith.constant 0 : index
    %0 = vector.load %arg1[%c0, %c0_0] : memref<128x605xi8, #tpu.memory_space<vmem>>, vector<128x605xi8>
    %1 = arith.sitofp %0 : vector<128x605xi8> to vector<128x605xf32>
    %2 = arith.truncf %1 : vector<128x605xf32> to vector<128x605xbf16>
    %c0_1 = arith.constant 0 : index
    %c0_2 = arith.constant 0 : index
    %3 = vector.load %arg2[%c0_1, %c0_2] : memref<605x288xbf16, #tpu.memory_space<vmem>>, vector<605x288xbf16>
    %cst = arith.constant dense<0.000000e+00> : vector<128x288xf32>
    %4 = tpu.matmul %2, %3, %cst {dimension_numbers = #tpu.dot_dimension_numbers<[1], [0], [0], [1], [0, 0, 1, 1], [], []>} : vector<128x605xbf16>, vector<605x288xbf16>, vector<128x288xf32> -> vector<128x288xf32>
    %c0_3 = arith.constant 0 : index
    %c0_4 = arith.constant 0 : index
    %5 = vector.load %arg3[%c0_3, %c0_4] : memref<1x288xf32, #tpu.memory_space<vmem>>, vector<1x288xf32>
    %6 = vector.broadcast %5 : vector<1x288xf32> to vector<128x288xf32>
    %7 = arith.addf %4, %6 : vector<128x288xf32>
    %cst_5 = arith.constant 0.000000e+00 : f32
    %8 = vector.broadcast %cst_5 : f32 to vector<128x288xf32>
    %9 = arith.maximumf %7, %8 : vector<128x288xf32>
    %10 = arith.truncf %9 : vector<128x288xf32> to vector<128x288xbf16>
    %c0_6 = arith.constant 0 : index
    %c0_7 = arith.constant 0 : index
    %11 = vector.load %arg4[%c0_6, %c0_7] : memref<288x128xbf16, #tpu.memory_space<vmem>>, vector<288x128xbf16>
    %cst_8 = arith.constant dense<0.000000e+00> : vector<128x128xf32>
    %12 = tpu.matmul %10, %11, %cst_8 {dimension_numbers = #tpu.dot_dimension_numbers<[1], [0], [0], [1], [0, 0, 1, 1], [], []>} : vector<128x288xbf16>, vector<288x128xbf16>, vector<128x128xf32> -> vector<128x128xf32>
    %c0_9 = arith.constant 0 : index
    %c0_10 = arith.constant 0 : index
    %13 = vector.load %arg5[%c0_9, %c0_10] : memref<1x128xf32, #tpu.memory_space<vmem>>, vector<1x128xf32>
    %14 = vector.broadcast %13 : vector<1x128xf32> to vector<128x128xf32>
    %15 = arith.addf %12, %14 : vector<128x128xf32>
    %cst_11 = arith.constant 0.000000e+00 : f32
    %16 = vector.broadcast %cst_11 : f32 to vector<128x128xf32>
    %17 = arith.maximumf %15, %16 : vector<128x128xf32>
    %18 = arith.truncf %17 : vector<128x128xf32> to vector<128x128xbf16>
    %c0_12 = arith.constant 0 : index
    %c0_13 = arith.constant 0 : index
    %19 = vector.load %arg6[%c0_12, %c0_13] : memref<128x128xbf16, #tpu.memory_space<vmem>>, vector<128x128xbf16>
    %cst_14 = arith.constant dense<0.000000e+00> : vector<128x128xf32>
    %20 = tpu.matmul %18, %19, %cst_14 {dimension_numbers = #tpu.dot_dimension_numbers<[1], [0], [0], [1], [0, 0, 1, 1], [], []>} : vector<128x128xbf16>, vector<128x128xbf16>, vector<128x128xf32> -> vector<128x128xf32>
    %c0_15 = arith.constant 0 : index
    %c0_16 = arith.constant 0 : index
    %21 = vector.load %arg7[%c0_15, %c0_16] : memref<1x128xf32, #tpu.memory_space<vmem>>, vector<1x128xf32>
    %22 = vector.broadcast %21 : vector<1x128xf32> to vector<128x128xf32>
    %23 = arith.addf %20, %22 : vector<128x128xf32>
    %24 = arith.truncf %23 : vector<128x128xf32> to vector<128x128xbf16>
    %c0_17 = arith.constant 0 : index
    %c0_18 = arith.constant 0 : index
    %25 = vector.load %arg8[%c0_17, %c0_18] : memref<128x128xbf16, #tpu.memory_space<vmem>>, vector<128x128xbf16>
    %cst_19 = arith.constant dense<0.000000e+00> : vector<128x128xf32>
    %26 = tpu.matmul %24, %25, %cst_19 {dimension_numbers = #tpu.dot_dimension_numbers<[1], [0], [0], [1], [0, 0, 1, 1], [], []>} : vector<128x128xbf16>, vector<128x128xbf16>, vector<128x128xf32> -> vector<128x128xf32>
    %c0_20 = arith.constant 0 : index
    %c0_21 = arith.constant 0 : index
    %27 = vector.load %arg9[%c0_20, %c0_21] : memref<1x128xf32, #tpu.memory_space<vmem>>, vector<1x128xf32>
    %28 = vector.broadcast %27 : vector<1x128xf32> to vector<128x128xf32>
    %29 = arith.addf %26, %28 : vector<128x128xf32>
    %30 = arith.truncf %29 : vector<128x128xf32> to vector<128x128xbf16>
    %c0_22 = arith.constant 0 : index
    %c0_23 = arith.constant 0 : index
    %31 = vector.load %arg10[%c0_22, %c0_23] : memref<128x128xbf16, #tpu.memory_space<vmem>>, vector<128x128xbf16>
    tpu.vector_store %arg10[%c0_22, %c0_23], %30 {strides = array<i32>} : memref<128x128xbf16, #tpu.memory_space<vmem>>, vector<128x128xbf16>,
    return
  }
  func.func @transform_0(%arg0: i32) -> (i32, i32) {
    %c0_i32 = arith.constant 0 : i32
    %c0_i32_0 = arith.constant 0 : i32
    return %arg0, %c0_i32 : i32, i32
  }
  func.func @transform_1(%arg0: i32) -> (i32, i32) {
    %c0_i32 = arith.constant 0 : i32
    %c0_i32_0 = arith.constant 0 : i32
    %c0_i32_1 = arith.constant 0 : i32
    return %c0_i32, %c0_i32_0 : i32, i32
  }
  func.func @transform_2(%arg0: i32) -> (i32, i32) {
    %c0_i32 = arith.constant 0 : i32
    %c0_i32_0 = arith.constant 0 : i32
    %c0_i32_1 = arith.constant 0 : i32
    return %c0_i32, %c0_i32_0 : i32, i32
  }
  func.func @transform_3(%arg0: i32) -> (i32, i32) {
    %c0_i32 = arith.constant 0 : i32
    %c0_i32_0 = arith.constant 0 : i32
    %c0_i32_1 = arith.constant 0 : i32
    return %c0_i32, %c0_i32_0 : i32, i32
  }
  func.func @transform_4(%arg0: i32) -> (i32, i32) {
    %c0_i32 = arith.constant 0 : i32
    %c0_i32_0 = arith.constant 0 : i32
    %c0_i32_1 = arith.constant 0 : i32
    return %c0_i32, %c0_i32_0 : i32, i32
  }
  func.func @transform_5(%arg0: i32) -> (i32, i32) {
    %c0_i32 = arith.constant 0 : i32
    %c0_i32_0 = arith.constant 0 : i32
    %c0_i32_1 = arith.constant 0 : i32
    return %c0_i32, %c0_i32_0 : i32, i32
  }
  func.func @transform_6(%arg0: i32) -> (i32, i32) {
    %c0_i32 = arith.constant 0 : i32
    %c0_i32_0 = arith.constant 0 : i32
    %c0_i32_1 = arith.constant 0 : i32
    return %c0_i32, %c0_i32_0 : i32, i32
  }
  func.func @transform_7(%arg0: i32) -> (i32, i32) {
    %c0_i32 = arith.constant 0 : i32
    %c0_i32_0 = arith.constant 0 : i32
    %c0_i32_1 = arith.constant 0 : i32
    return %c0_i32, %c0_i32_0 : i32, i32
  }
  func.func @transform_8(%arg0: i32) -> (i32, i32) {
    %c0_i32 = arith.constant 0 : i32
    %c0_i32_0 = arith.constant 0 : i32
    %c0_i32_1 = arith.constant 0 : i32
    return %c0_i32, %c0_i32_0 : i32, i32
  }
  func.func @transform_9(%arg0: i32) -> (i32, i32) {
    %c0_i32 = arith.constant 0 : i32
    %c0_i32_0 = arith.constant 0 : i32
    return %arg0, %c0_i32 : i32, i32
  }
}

</mosaic_0001>

<bundles_post_ra>
// kernel: trash_pickup_forward.1
= control target key start
LH: loop header
LB: loop body
LE: loop exit
PB: predicated region body
PF: predicated region fallthrough
CT: control target
= control target key end

     0   :  { %s3747_s30 = smov 0   ;;  %s5187_s0 = inlined_call_operand.vmem [shape: s8[256,605], index: 0, kind: input, shape index: {}]   ;;  %s5188_s1 = inlined_call_operand.vmem [shape: bf16[605,288], index: 1, kind: input, shape index: {}]   ;;  %s5189_s2 = inlined_call_operand.vmem [shape: f32[1,288], index: 2, kind: input, shape index: {}]   ;;  %s5190_s3 = inlined_call_operand.vmem [shape: bf16[288,128], index: 3, kind: input, shape index: {}]   ;;  %s5191_s4 = inlined_call_operand.vmem [shape: f32[1,128], index: 4, kind: input, shape index: {}]   ;;  %s5192_s5 = inlined_call_operand.vmem [shape: bf16[128,128], index: 5, kind: input, shape index: {}]   ;;  %s5193_s6 = inlined_call_operand.vmem [shape: f32[1,128], index: 6, kind: input, shape index: {}]   ;;  %s5194_s7 = inlined_call_operand.vmem [shape: bf16[128,128], index: 7, kind: input, shape index: {}]   ;;  %s5195_s8 = inlined_call_operand.vmem [shape: f32[1,128], index: 8, kind: input, shape index: {}]   ;;  %s5196_s9 = inlined_call_operand.vmem [shape: bf16[256,128], index: 9, kind: output, shape index: {}]  }
   0x1 LB: > { %s2844_s10 = sadd.s32 4294967295, %s3694_s30   ;;  %p2848_p0 = scmp.ge.s32.totalorder %s3694_s30, 1  ;;  %s3694_s30 = sphi %s3747_s30, %s19_s30  }
   0x2   : > { %p289_p1 = scmp.lt.s32.totalorder %s3694_s30, 3 }
   0x4   : > { %p290_p2 = pnand %p2848_p0, %p289_p1 }
   0x6   : > { %293 = sbr.rel (%p290_p2) target bundleno = 1118 (0x45e), region = 56 }
   0xb   : > { %v2939_v0 = vld [vmem:[%s5188_s1 + $0xa8] sm:$0xf]  ;;  %v3501_v1 = vld [vmem:[%s5188_s1 + $0xb0] sm:$0xf0]  ;;  %v2927_v11 = vld [vmem:[%s5188_s1 + $0x90] sm:$0xf] }
   0xc   : > { %v3035_v2 = vld [vmem:[%s5188_s1 + $0x168] sm:$0xf]  ;;  %v2940_v3 = vor.u32 %v3501_v1, %v2939_v0  ;;  %v3525_v4 = vld [vmem:[%s5188_s1 + $0x170] sm:$0xf0]  ;;  %v3498_v13 = vld [vmem:[%s5188_s1 + $0x98] sm:$0xf0] }
   0xd   : > { %v3131_v5 = vld [vmem:[%s5188_s1 + $0x228] sm:$0xf]  ;;  %v3549_v6 = vld [vmem:[%s5188_s1 + $0x230] sm:$0xf0]  ;;  %v3036_v7 = vor.u32 %v3525_v4, %v3035_v2  ;;  %v3023_v14 = vld [vmem:[%s5188_s1 + $0x150] sm:$0xf]  ;;  %v2928_v16 = vor.u32 %v3498_v13, %v2927_v11 }
   0xe   : > { %v3132_v8 = vor.u32 %v3549_v6, %v3131_v5  ;;  %v3227_v9 = vld [vmem:[%s5188_s1 + $0x2e8] sm:$0xf]  ;;  %v3573_v10 = vld [vmem:[%s5188_s1 + $0x2f0] sm:$0xf0]  ;;  %1363 = vmatpush.bf16.msra.mxu0 %v2940_v3  ;;  %v3522_v15 = vld [vmem:[%s5188_s1 + $0x158] sm:$0xf0] }
   0xf   : > { %v3228_v12 = vor.u32 %v3573_v10, %v3227_v9  ;;  %1412 = vmatpush.bf16.msra.mxu1 %v3036_v7  ;;  %v3024_v17 = vor.u32 %v3522_v15, %v3023_v14  ;;  %v3119_v18 = vld [vmem:[%s5188_s1 + $0x210] sm:$0xf]  ;;  %v3546_v19 = vld [vmem:[%s5188_s1 + $0x218] sm:$0xf0]  ;;  %v2915_v23 = vld [vmem:[%s5188_s1 + $0x78] sm:$0xf] }
  0x10   : > { %1461 = vmatpush.bf16.msra.mxu2 %v3132_v8  ;;  %v3215_v20 = vld [vmem:[%s5188_s1 + $0x2d0] sm:$0xf]  ;;  %v3120_v21 = vor.u32 %v3546_v19, %v3119_v18  ;;  %v3570_v22 = vld [vmem:[%s5188_s1 + $0x2d8] sm:$0xf0]  ;;  %v3495_v24 = vld [vmem:[%s5188_s1 + $0x80] sm:$0xf0] }
  0x11   : > { %1510 = vmatpush.bf16.msra.mxu3 %v3228_v12  ;;  %v3216_v25 = vor.u32 %v3570_v22, %v3215_v20  ;;  %v3011_v26 = vld [vmem:[%s5188_s1 + $0x138] sm:$0xf]  ;;  %v3519_v27 = vld [vmem:[%s5188_s1 + $0x140] sm:$0xf0]  ;;  %v2916_v29 = vor.u32 %v3495_v24, %v2915_v23  ;;  %v2903_v35 = vld [vmem:[%s5188_s1 + $0x60] sm:$0xf] }
  0x12   : > { %v3107_v28 = vld [vmem:[%s5188_s1 + $0x1f8] sm:$0xf]  ;;  %1364 = vmatpush.bf16.msra.mxu0 %v2928_v16  ;;  %v3543_v30 = vld [vmem:[%s5188_s1 + $0x200] sm:$0xf0]  ;;  %v3012_v33 = vor.u32 %v3519_v27, %v3011_v26  ;;  %v3492_v36 = vld [vmem:[%s5188_s1 + $0x68] sm:$0xf0] }
  0x13   : > { %v3203_v31 = vld [vmem:[%s5188_s1 + $0x2b8] sm:$0xf]  ;;  %v3567_v32 = vld [vmem:[%s5188_s1 + $0x2c0] sm:$0xf0]  ;;  %1413 = vmatpush.bf16.msra.mxu1 %v3024_v17  ;;  %v3108_v34 = vor.u32 %v3543_v30, %v3107_v28  ;;  %v2999_v37 = vld [vmem:[%s5188_s1 + $0x120] sm:$0xf]  ;;  %v2904_v44 = vor.u32 %v3492_v36, %v2903_v35 }
  0x14   : > { %1462 = vmatpush.bf16.msra.mxu2 %v3120_v21  ;;  %v3204_v38 = vor.u32 %v3567_v32, %v3203_v31  ;;  %v3516_v39 = vld [vmem:[%s5188_s1 + $0x128] sm:$0xf0]  ;;  %v3095_v40 = vld [vmem:[%s5188_s1 + $0x1e0] sm:$0xf]  ;;  %v2891_v47 = vld [vmem:[%s5188_s1 + $0x48] sm:$0xf] }
  0x15   : > { %1511 = vmatpush.bf16.msra.mxu3 %v3216_v25  ;;  %v3540_v41 = vld [vmem:[%s5188_s1 + $0x1e8] sm:$0xf0]  ;;  %v3191_v42 = vld [vmem:[%s5188_s1 + $0x2a0] sm:$0xf]  ;;  %v3000_v45 = vor.u32 %v3516_v39, %v2999_v37  ;;  %v3489_v48 = vld [vmem:[%s5188_s1 + $0x50] sm:$0xf0] }
  0x16   : > { %v3564_v43 = vld [vmem:[%s5188_s1 + $0x2a8] sm:$0xf0]  ;;  %1365 = vmatpush.bf16.msra.mxu0 %v2916_v29  ;;  %v3096_v46 = vor.u32 %v3540_v41, %v3095_v40  ;;  %v2987_v49 = vld [vmem:[%s5188_s1 + $0x108] sm:$0xf]  ;;  %v3513_v51 = vld [vmem:[%s5188_s1 + $0x110] sm:$0xf0]  ;;  %v2892_v56 = vor.u32 %v3489_v48, %v2891_v47 }
  0x17   : > { %1414 = vmatpush.bf16.msra.mxu1 %v3012_v33  ;;  %v3192_v50 = vor.u32 %v3564_v43, %v3191_v42  ;;  %v3083_v52 = vld [vmem:[%s5188_s1 + $0x1c8] sm:$0xf]  ;;  %v3537_v53 = vld [vmem:[%s5188_s1 + $0x1d0] sm:$0xf0]  ;;  %v2988_v57 = vor.u32 %v3513_v51, %v2987_v49  ;;  %v2879_v59 = vld [vmem:[%s5188_s1 + $0x30] sm:$0xf] }
  0x18   : > { %1463 = vmatpush.bf16.msra.mxu2 %v3108_v34  ;;  %v3179_v54 = vld [vmem:[%s5188_s1 + $0x288] sm:$0xf]  ;;  %v3561_v55 = vld [vmem:[%s5188_s1 + $0x290] sm:$0xf0]  ;;  %v3084_v58 = vor.u32 %v3537_v53, %v3083_v52  ;;  %v3486_v60 = vld [vmem:[%s5188_s1 + $0x38] sm:$0xf0] }
  0x19   : > { %1512 = vmatpush.bf16.msra.mxu3 %v3204_v38  ;;  %v2975_v61 = vld [vmem:[%s5188_s1 + $0xf0] sm:$0xf]  ;;  %v3180_v62 = vor.u32 %v3561_v55, %v3179_v54  ;;  %v3510_v63 = vld [vmem:[%s5188_s1 + $0xf8] sm:$0xf0]  ;;  %v2880_v4 = vor.u32 %v3486_v60, %v2879_v59  ;;  %v2867_v5 = vld [vmem:[%s5188_s1 + $0x18] sm:$0xf] }
  0x1a   : > { %1366 = vmatpush.bf16.msra.mxu0 %v2904_v44  ;;  %v3071_v0 = vld [vmem:[%s5188_s1 + $0x1b0] sm:$0xf]  ;;  %v3534_v1 = vld [vmem:[%s5188_s1 + $0x1b8] sm:$0xf0]  ;;  %v3483_v6 = vld [vmem:[%s5188_s1 + $0x20] sm:$0xf0]  ;;  %v2976_v8 = vor.u32 %v3510_v63, %v2975_v61 }
  0x1b   : > { %1415 = vmatpush.bf16.msra.mxu1 %v3000_v45  ;;  %v3167_v2 = vld [vmem:[%s5188_s1 + $0x270] sm:$0xf]  ;;  %v3558_v3 = vld [vmem:[%s5188_s1 + $0x278] sm:$0xf0]  ;;  %v2963_v7 = vld [vmem:[%s5188_s1 + $0xd8] sm:$0xf]  ;;  %v3072_v9 = vor.u32 %v3534_v1, %v3071_v0  ;;  %v2868_v18 = vor.u32 %v3483_v6, %v2867_v5 }
  0x1c   : > { %1464 = vmatpush.bf16.msra.mxu2 %v3096_v46  ;;  %v3507_v10 = vld [vmem:[%s5188_s1 + $0xe0] sm:$0xf0]  ;;  %v3059_v11 = vld [vmem:[%s5188_s1 + $0x198] sm:$0xf]  ;;  %v3168_v13 = vor.u32 %v3558_v3, %v3167_v2  ;;  %s2849_s28 = sshll.u32 %s2844_s10, 2  ;;  %vm1350_vm0 = vcmask 1045504  }
  0x1d   : > { %1513 = vmatpush.bf16.msra.mxu3 %v3192_v50  ;;  %v3531_v12 = vld [vmem:[%s5188_s1 + $0x1a0] sm:$0xf0]  ;;  %v3155_v14 = vld [vmem:[%s5188_s1 + $0x258] sm:$0xf]  ;;  %v2855_v16 = vld [vmem:[%s5188_s1] sm:$0xf]  ;;  %v2964_v26 = vor.u32 %v3507_v10, %v2963_v7 }
  0x1e   : > { %1367 = vmatpush.bf16.msra.mxu0 %v2892_v56  ;;  %v3555_v15 = vld [vmem:[%s5188_s1 + $0x260] sm:$0xf0]  ;;  %v3480_v17 = vld [vmem:[%s5188_s1 + $0x8] sm:$0xf0]  ;;  %p327_p3 = scmp.lt.s32.totalorder %s2849_s28, 7  ;;  %vm1351_vm1 = vcmask 1046528   ;;  %v3060_v27 = vor.u32 %v3531_v12, %v3059_v11 }
  0x1f   : > { %1416 = vmatpush.bf16.msra.mxu1 %v2988_v57  ;;  %v2951_v19 = vld [vmem:[%s5188_s1 + $0xc0] sm:$0xf]  ;;  %v3504_v20 = vld [vmem:[%s5188_s1 + $0xc8] sm:$0xf0]  ;;  %v3299_v25 = vld [vmem:[%s5188_s1 + $0x378] sm:$0xf]  ;;  %v3156_v31 = vor.u32 %v3555_v15, %v3155_v14  ;;  %v2856_v40 = vor.u32 %v3480_v17, %v2855_v16 }
  0x20   : > { %1465 = vmatpush.bf16.msra.mxu2 %v3084_v58  ;;  %v3047_v21 = vld [vmem:[%s5188_s1 + $0x180] sm:$0xf]  ;;  %v3528_v22 = vld [vmem:[%s5188_s1 + $0x188] sm:$0xf0]  ;;  %s5226_s28 = smov (!%p327_p3, %s2849_s28), 7  ;;  %v3696_v33 = vmov 65535   ;;  %v2952_v41 = vor.u32 %v3504_v20, %v2951_v19 }
  0x21   : > { %1514 = vmatpush.bf16.msra.mxu3 %v3180_v62  ;;  %v3143_v23 = vld [vmem:[%s5188_s1 + $0x240] sm:$0xf]  ;;  %v3552_v24 = vld [vmem:[%s5188_s1 + $0x248] sm:$0xf0]  ;;  %v3037_v29 = vld [vmem:[%s5188_s1 + $0x174] sm:$0xf0]  ;;  %v3048_v42 = vor.u32 %v3528_v22, %v3047_v21 }
  0x22   : > { %1368 = vmatpush.bf16.msra.mxu0 %v2880_v4  ;;  %v3524_v28 = vld [vmem:[%s5188_s1 + $0x16c] sm:$0xf]  ;;  %v3591_v30 = vld [vmem:[%s5188_s1 + $0x380] sm:$0x70]  ;;  %v1352_v34 = vsel %vm1350_vm0, 4294967295, %v3696_v33  ;;  %s3674_s20 = smul.u32 40, %s5226_s28  ;;  %v3144_v43 = vor.u32 %v3552_v24, %v3143_v23 }
  0x23   : > { %1417 = vmatpush.bf16.msra.mxu1 %v2976_v8  ;;  %v3300_v32 = vor.u32 %v3591_v30, %v3299_v25  ;;  %v3500_v35 = vld [vmem:[%s5188_s1 + $0xac] sm:$0xf]  ;;  %v2941_v36 = vld [vmem:[%s5188_s1 + $0xb4] sm:$0xf0]  ;;  %v3970_v37 = vsel %vm1351_vm1, %v1352_v34, 0  ;;  %v3040_v47 = vor.u32 %v3524_v28, %v3037_v29  ;;  %vm1325_vm2 = vcmask 760832  }
  0x24   : > { %1466 = vmatpush.bf16.msra.mxu2 %v3072_v9  ;;  %v3521_v38 = vld [vmem:[%s5188_s1 + $0x154] sm:$0xf]  ;;  %v3025_v39 = vld [vmem:[%s5188_s1 + $0x15c] sm:$0xf0]  ;;  %s3981_s26 = scalar_lea.vmem %s5187_s0, %s3674_s20  ;;  %v2944_v49 = vor.u32 %v3500_v35, %v2941_v36  ;;  %v3588_v3 = vld [vmem:[%s5188_s1 + $0x368] sm:$0xf0] }
  0x25   : > { %1515 = vmatpush.bf16.msra.mxu3 %v3168_v13  ;;  %v3984_v44 = vld [vmem:[%s3981_s26] sm:$0xff]  ;;  %v3987_v45 = vld [vmem:[%s3981_s26 + $0x8] sm:$0xff]  ;;  %v3990_v46 = vld [vmem:[%s3981_s26 + $0x10] sm:$0xff]  ;;  %v1355_v48 = vand.u32 %v3300_v32, %v3970_v37  ;;  %v3028_v50 = vor.u32 %v3521_v38, %v3025_v39  ;;  %vm2318_vm3 = vcmask 261120   ;;  %s2851_s27 = sshll.u32 %s2844_s10, 4 }
  0x26   : > { %1369 = vmatpush.bf16.msra.mxu0 %v2868_v18  ;;  %v360_v51 = vunpack.c.0.s8 %v3984_v44  ;;  %v365_v52 = vunpack.c.1.s8 %v3984_v44  ;;  %v361_v53 = vunpack.c.0.s8 %v3987_v45  ;;  %v366_v54 = vunpack.c.1.s8 %v3987_v45  ;;  %v343_v55 = vld [vmem:[%s3981_s26 + $0x18] sm:$0xff]  ;;  %v3497_v60 = vld [vmem:[%s5188_s1 + $0x94] sm:$0xf]  ;;  %v2929_v61 = vld [vmem:[%s5188_s1 + $0x9c] sm:$0xf0]  ;;  %p334_p4 = scmp.lt.s32.totalorder %s2851_s27, 31 }
  0x27   : > { %1418 = vmatpush.bf16.msra.mxu1 %v2964_v26  ;;  %v362_v56 = vunpack.c.0.s8 %v3990_v46  ;;  %v367_v57 = vunpack.c.1.s8 %v3990_v46  ;;  %v363_v58 = vunpack.c.0.s8 %v343_v55  ;;  %v368_v59 = vunpack.c.1.s8 %v343_v55  ;;  %v3287_v2 = vld [vmem:[%s5188_s1 + $0x360] sm:$0xf]  ;;  %v3518_v19 = vld [vmem:[%s5188_s1 + $0x13c] sm:$0xf]  ;;  %v3013_v20 = vld [vmem:[%s5188_s1 + $0x144] sm:$0xf0] }
  0x28   : > { %1467 = vmatpush.bf16.msra.mxu2 %v3060_v27  ;;  %v440_v62 = vcvt.s32.f32 %v360_v51  ;;  %v445_v63 = vcvt.s32.f32 %v365_v52  ;;  %v441_v0 = vcvt.s32.f32 %v361_v53  ;;  %v446_v1 = vcvt.s32.f32 %v366_v54  ;;  %v3494_v24 = vld [vmem:[%s5188_s1 + $0x7c] sm:$0xf]  ;;  %v2917_v25 = vld [vmem:[%s5188_s1 + $0x84] sm:$0xf0]  ;;  %v3585_v27 = vld [vmem:[%s5188_s1 + $0x350] sm:$0xf0] }
  0x29   : > { %1516 = vmatpush.bf16.msra.mxu3 %v3156_v31  ;;  %v442_v4 = vcvt.s32.f32 %v362_v56  ;;  %v447_v5 = vcvt.s32.f32 %v367_v57  ;;  %v443_v6 = vcvt.s32.f32 %v363_v58  ;;  %v448_v7 = vcvt.s32.f32 %v368_v59  ;;  %v3275_v26 = vld [vmem:[%s5188_s1 + $0x348] sm:$0xf]  ;;  %v2905_v52 = vld [vmem:[%s5188_s1 + $0x6c] sm:$0xf0]  ;;  %s5228_s27 = smov (!%p334_p4, %s2851_s27), 31 }
  0x2a   : > { %1370 = vmatpush.bf16.msra.mxu0 %v2856_v40  ;;  %v4012_v8 = vpack.c.bf16 %v445_v63, %v440_v62  ;;  %v4014_v9 = vpack.c.bf16 %v446_v1, %v441_v0  ;;  %v2932_v10 = vor.u32 %v3497_v60, %v2929_v61  ;;  %v3288_v13 = vor.u32 %v3588_v3, %v3287_v2  ;;  %s2852_s12 = sshll.u32 %s5228_s27, 2 }
  0x2b   : > { %1419 = vmatpush.bf16.msra.mxu1 %v2952_v41  ;;  %v4016_v11 = vpack.c.bf16 %v447_v5, %v442_v4  ;;  %v4018_v12 = vpack.c.bf16 %v448_v7, %v443_v6  ;;  %v370_v14 = vunpack.c.2.s8 %v3984_v44  ;;  %v375_v15 = vunpack.c.3.s8 %v3984_v44  ;;  %v345_v44 = vld [vmem:[%s3981_s26 + $0x28] sm:$0xff]  ;;  %s5174_s15 = scalar_lea.vmem %s5196_s9, %s2852_s12 }
  0x2c   : > { %1468 = vmatpush.bf16.msra.mxu2 %v3048_v42  ;;  %v371_v16 = vunpack.c.2.s8 %v3987_v45  ;;  %v376_v17 = vunpack.c.3.s8 %v3987_v45  ;;  %v372_v18 = vunpack.c.2.s8 %v3990_v46  ;;  %v377_v21 = vunpack.c.3.s8 %v3990_v46  ;;  %v346_v45 = vld [vmem:[%s3981_s26 + $0x30] sm:$0xff]  ;;  %v3515_v46 = vld [vmem:[%s5188_s1 + $0x124] sm:$0xf] }
  0x2d   : > { %1517 = vmatpush.bf16.msra.mxu3 %v3144_v43  ;;  %5207 = vst [vmem:[#allocation2_spill] sm:$0xff] %v4016_v11  ;;  %1371 = vmatmul.bf16.vlgmr.msra.gmra.mxu0 %v4012_v8  ;;  %v373_v22 = vunpack.c.2.s8 %v343_v55  ;;  %v378_v23 = vunpack.c.3.s8 %v343_v55  ;;  %v450_v28 = vcvt.s32.f32 %v370_v14  ;;  %v455_v29 = vcvt.s32.f32 %v375_v15  ;;  %v3512_v14 = vld [vmem:[%s5188_s1 + $0x10c] sm:$0xf]  ;;  %v2989_v15 = vld [vmem:[%s5188_s1 + $0x114] sm:$0xf0] }
  0x2e   : > { %1561 = vmatpush.bf16.msrb.mxu0 %v1355_v48  ;;  %1420 = vmatmul.bf16.vlgmr.msra.gmra.mxu1 %v4014_v9  ;;  %v3016_v30 = vor.u32 %v3518_v19, %v3013_v20  ;;  %v451_v31 = vcvt.s32.f32 %v371_v16  ;;  %v456_v32 = vcvt.s32.f32 %v376_v17  ;;  %v452_v33 = vcvt.s32.f32 %v372_v18  ;;  %v3491_v48 = vld [vmem:[%s5188_s1 + $0x64] sm:$0xf]  ;;  %v3263_v16 = vld [vmem:[%s5188_s1 + $0x330] sm:$0xf]  ;;  %v3582_v18 = vld [vmem:[%s5188_s1 + $0x338] sm:$0xf0] }
  0x2f   : > { %1608 = vmatpush.bf16.msrb.mxu1 %v2944_v49  ;;  %1469 = vmatmul.bf16.vlgmr.msra.gmra.mxu2 %v4016_v11  ;;  %v2920_v34 = vor.u32 %v3494_v24, %v2917_v25  ;;  %v457_v35 = vcvt.s32.f32 %v377_v21  ;;  %v453_v36 = vcvt.s32.f32 %v373_v22  ;;  %v458_v38 = vcvt.s32.f32 %v378_v23  ;;  %v347_v49 = vld [vmem:[%s3981_s26 + $0x38] sm:$0xff]  ;;  %v3488_v19 = vld [vmem:[%s5188_s1 + $0x4c] sm:$0xf] }
  0x30   : > { %1657 = vmatpush.bf16.msrb.mxu2 %v3040_v47  ;;  %1518 = vmatmul.bf16.vlgmr.msra.gmra.mxu3 %v4018_v12  ;;  %v3276_v39 = vor.u32 %v3585_v27, %v3275_v26  ;;  %v4048_v40 = vpack.c.bf16 %v455_v29, %v450_v28  ;;  %v4050_v41 = vpack.c.bf16 %v456_v32, %v451_v31  ;;  %v3001_v47 = vld [vmem:[%s5188_s1 + $0x12c] sm:$0xf0]  ;;  %v380_v54 = vunpack.c.0.s8 %v345_v44  ;;  %v2893_v20 = vld [vmem:[%s5188_s1 + $0x54] sm:$0xf0] }
  0x31   : > { %v4052_v42 = vpack.c.bf16 %v457_v35, %v452_v33  ;;  %v4054_v43 = vpack.c.bf16 %v458_v38, %v453_v36  ;;  %v3004_v51 = vor.u32 %v3515_v46, %v3001_v47  ;;  %v2908_v53 = vor.u32 %v3491_v48, %v2905_v52  ;;  %v4115_v48 = vld [vmem:[%s3981_s26 + $0x50] sm:$0xff] }
  0x32   : > { %1562 = vmatpush.bf16.msrb.mxu0 %v3288_v13  ;;  %v385_v55 = vunpack.c.1.s8 %v345_v44  ;;  %v381_v56 = vunpack.c.0.s8 %v346_v45  ;;  %v386_v57 = vunpack.c.1.s8 %v346_v45  ;;  %v382_v58 = vunpack.c.0.s8 %v347_v49  ;;  %v3509_v52 = vld [vmem:[%s5188_s1 + $0xf4] sm:$0xf] }
  0x33   : > { %1609 = vmatpush.bf16.msrb.mxu1 %v2932_v10  ;;  %5208 = vst [vmem:[#allocation3_spill] sm:$0xff] %v4052_v42  ;;  %v387_v59 = vunpack.c.1.s8 %v347_v49  ;;  %v460_v62 = vcvt.s32.f32 %v380_v54  ;;  %v2992_v17 = vor.u32 %v3512_v14, %v2989_v15  ;;  %v3264_v21 = vor.u32 %v3582_v18, %v3263_v16  ;;  %v3485_v54 = vld [vmem:[%s5188_s1 + $0x34] sm:$0xf] }
  0x34   : > { %1658 = vmatpush.bf16.msrb.mxu2 %v3028_v50  ;;  %v348_v50 = vld [vmem:[%s3981_s26 + $0x40] sm:$0xff]  ;;  %v465_v63 = vcvt.s32.f32 %v385_v55  ;;  %v461_v0 = vcvt.s32.f32 %v381_v56  ;;  %v466_v1 = vcvt.s32.f32 %v386_v57  ;;  %v462_v2 = vcvt.s32.f32 %v382_v58  ;;  %v3251_v57 = vld [vmem:[%s5188_s1 + $0x318] sm:$0xf] }
  0x35   : > { %v383_v60 = vunpack.c.0.s8 %v348_v50  ;;  %v388_v61 = vunpack.c.1.s8 %v348_v50  ;;  %v467_v3 = vcvt.s32.f32 %v387_v59  ;;  %v2896_v22 = vor.u32 %v3488_v19, %v2893_v20  ;;  %v2881_v56 = vld [vmem:[%s5188_s1 + $0x3c] sm:$0xf0]  ;;  %v3579_v58 = vld [vmem:[%s5188_s1 + $0x320] sm:$0xf0] }
  0x36   : > { %1563 = vmatpush.bf16.msrb.mxu0 %v3276_v39  ;;  %v4076_v6 = vpack.c.bf16 %v465_v63, %v460_v62  ;;  %v4078_v7 = vpack.c.bf16 %v466_v1, %v461_v0  ;;  %v390_v23 = vunpack.c.2.s8 %v345_v44  ;;  %v395_v24 = vunpack.c.3.s8 %v345_v44 }
  0x37   : > { %1610 = vmatpush.bf16.msrb.mxu1 %v2920_v34  ;;  %v463_v4 = vcvt.s32.f32 %v383_v60  ;;  %v468_v5 = vcvt.s32.f32 %v388_v61  ;;  %v4080_v10 = vpack.c.bf16 %v467_v3, %v462_v2  ;;  %v391_v25 = vunpack.c.2.s8 %v346_v45 }
  0x38   : > { %1659 = vmatpush.bf16.msrb.mxu2 %v3016_v30  ;;  %v396_v26 = vunpack.c.3.s8 %v346_v45  ;;  %v392_v27 = vunpack.c.2.s8 %v347_v49  ;;  %v397_v28 = vunpack.c.3.s8 %v347_v49  ;;  %v393_v29 = vunpack.c.2.s8 %v348_v50  ;;  %v4120_v49 = vld [vmem:[%s3981_s26 + $0x58] sm:$0xff] }
  0x39   : > { %5209 = vst [vmem:[#allocation4_spill] sm:$0xff] %v4080_v10  ;;  %v4082_v13 = vpack.c.bf16 %v468_v5, %v463_v4  ;;  %v398_v30 = vunpack.c.3.s8 %v348_v50  ;;  %v470_v31 = vcvt.s32.f32 %v390_v23  ;;  %v475_v32 = vcvt.s32.f32 %v395_v24  ;;  %v4123_v50 = vld [vmem:[%s3981_s26 + $0x60] sm:$0xff] }
  0x3a   : > { %1564 = vmatpush.bf16.msrb.mxu0 %v3264_v21  ;;  %v471_v33 = vcvt.s32.f32 %v391_v25  ;;  %v476_v34 = vcvt.s32.f32 %v396_v26  ;;  %v472_v35 = vcvt.s32.f32 %v392_v27  ;;  %v477_v36 = vcvt.s32.f32 %v397_v28  ;;  %v3548_v25 = vld [vmem:[%s5188_s1 + $0x22c] sm:$0xf]  ;;  %v3133_v26 = vld [vmem:[%s5188_s1 + $0x234] sm:$0xf0]  ;;  %v3506_v28 = vld [vmem:[%s5188_s1 + $0xdc] sm:$0xf] }
  0x3b   : > { %1611 = vmatpush.bf16.msrb.mxu1 %v2908_v53  ;;  %v473_v38 = vcvt.s32.f32 %v393_v29  ;;  %v478_v39 = vcvt.s32.f32 %v398_v30  ;;  %v4106_v44 = vpack.c.bf16 %v475_v32, %v470_v31  ;;  %v2977_v53 = vld [vmem:[%s5188_s1 + $0xfc] sm:$0xf0]  ;;  %v2884_v59 = vor.u32 %v3485_v54, %v2881_v56  ;;  %v2965_v29 = vld [vmem:[%s5188_s1 + $0xe4] sm:$0xf0]  ;;  %v3482_v30 = vld [vmem:[%s5188_s1 + $0x1c] sm:$0xf] }
  0x3c   : > { %1660 = vmatpush.bf16.msrb.mxu2 %v3004_v51  ;;  %v4108_v45 = vpack.c.bf16 %v476_v34, %v471_v33  ;;  %v4110_v46 = vpack.c.bf16 %v477_v36, %v472_v35  ;;  %v4126_v51 = vld [vmem:[%s3981_s26 + $0x68] sm:$0xff]  ;;  %v2980_v55 = vor.u32 %v3509_v52, %v2977_v53  ;;  %v3252_v60 = vor.u32 %v3579_v58, %v3251_v57  ;;  %v3545_v33 = vld [vmem:[%s5188_s1 + $0x214] sm:$0xf]  ;;  %v3121_v34 = vld [vmem:[%s5188_s1 + $0x21c] sm:$0xf0] }
  0x3d   : > { %1376 = vmatmul.bf16.gmra.mxu0 %v4048_v40  ;;  %v4112_v47 = vpack.c.bf16 %v478_v39, %v473_v38  ;;  %v400_v61 = vunpack.c.0.s8 %v4115_v48  ;;  %v405_v62 = vunpack.c.1.s8 %v4115_v48  ;;  %v401_v63 = vunpack.c.0.s8 %v4120_v49  ;;  %v2869_v32 = vld [vmem:[%s5188_s1 + $0x24] sm:$0xf0]  ;;  %v3542_v39 = vld [vmem:[%s5188_s1 + $0x1fc] sm:$0xf]  ;;  %v3239_v53 = vld [vmem:[%s5188_s1 + $0x300] sm:$0xf] }
  0x3e   : > { %1425 = vmatmul.bf16.gmra.mxu1 %v4050_v41  ;;  %5210 = vst [vmem:[#allocation5_spill] sm:$0xff] %v4110_v46  ;;  %v406_v0 = vunpack.c.1.s8 %v4120_v49  ;;  %v402_v1 = vunpack.c.0.s8 %v4123_v50  ;;  %v407_v2 = vunpack.c.1.s8 %v4123_v50  ;;  %v403_v3 = vunpack.c.0.s8 %v4126_v51  ;;  %1565 = vmatpush.bf16.msrb.mxu0 %v3252_v60  ;;  %v3109_v52 = vld [vmem:[%s5188_s1 + $0x204] sm:$0xf0]  ;;  %v3576_v58 = vld [vmem:[%s5188_s1 + $0x308] sm:$0xf0] }
  0x3f   : > { %1474 = vmatmul.bf16.gmra.mxu2 %v4052_v42  ;;  %1612 = vmatpush.bf16.msrb.mxu1 %v2896_v22  ;;  %v408_v4 = vunpack.c.1.s8 %v4126_v51  ;;  %v480_v5 = vcvt.s32.f32 %v400_v61  ;;  %v485_v14 = vcvt.s32.f32 %v405_v62  ;;  %v481_v15 = vcvt.s32.f32 %v401_v63  ;;  %v3097_v63 = vld [vmem:[%s5188_s1 + $0x1ec] sm:$0xf0] }
  0x40   : > { %1523 = vmatmul.bf16.gmra.mxu3 %v4054_v43  ;;  %1661 = vmatpush.bf16.msrb.mxu2 %v2992_v17  ;;  %v486_v16 = vcvt.s32.f32 %v406_v0  ;;  %v482_v17 = vcvt.s32.f32 %v402_v1  ;;  %v487_v18 = vcvt.s32.f32 %v407_v2  ;;  %v483_v19 = vcvt.s32.f32 %v403_v3 }
  0x41   : > { %v488_v20 = vcvt.s32.f32 %v408_v4  ;;  %v4156_v21 = vpack.c.bf16 %v485_v14, %v480_v5  ;;  %v3136_v27 = vor.u32 %v3548_v25, %v3133_v26  ;;  %v2968_v31 = vor.u32 %v3506_v28, %v2965_v29  ;;  %v4233_v26 = vld [vmem:[%s3981_s26 + $0x78] sm:$0xff]  ;;  %v4244_v29 = vld [vmem:[%s3981_s26 + $0x80] sm:$0xff] }
  0x42   : > { %v4158_v22 = vpack.c.bf16 %v486_v16, %v481_v15  ;;  %v4160_v23 = vpack.c.bf16 %v487_v18, %v482_v17  ;;  %v410_v35 = vunpack.c.2.s8 %v4115_v48  ;;  %v2872_v36 = vor.u32 %v3482_v30, %v2869_v32  ;;  %v3590_v15 = vld [vmem:[%s5188_s1 + $0x37c] sm:$0xf]  ;;  %v3301_v16 = vld [vmem:[%s5188_s1 + $0x384] sm:$0x70]  ;;  %v3085_v28 = vld [vmem:[%s5188_s1 + $0x1d4] sm:$0xf0] }
  0x43   : > { %1613 = vmatpush.bf16.msrb.mxu1 %v2884_v59  ;;  %v4162_v24 = vpack.c.bf16 %v488_v20, %v483_v19  ;;  %1706 = vmatpush.bf16.msrb.mxu3 %v3136_v27  ;;  %v3124_v38 = vor.u32 %v3545_v33, %v3121_v34  ;;  %v415_v54 = vunpack.c.3.s8 %v4115_v48  ;;  %v416_v56 = vunpack.c.3.s8 %v4120_v49  ;;  %v3536_v27 = vld [vmem:[%s5188_s1 + $0x1cc] sm:$0xf]  ;;  %v3503_v33 = vld [vmem:[%s5188_s1 + $0xc4] sm:$0xf]  ;;  %v2953_v34 = vld [vmem:[%s5188_s1 + $0xcc] sm:$0xf0] }
  0x44   : > { %1662 = vmatpush.bf16.msrb.mxu2 %v2980_v55  ;;  %5211 = vst [vmem:[#allocation6_spill] sm:$0xff] %v4160_v23  ;;  %v411_v55 = vunpack.c.2.s8 %v4120_v49  ;;  %v412_v57 = vunpack.c.2.s8 %v4123_v50  ;;  %v417_v59 = vunpack.c.3.s8 %v4123_v50  ;;  %v413_v60 = vunpack.c.2.s8 %v4126_v51  ;;  %v3539_v49 = vld [vmem:[%s5188_s1 + $0x1e4] sm:$0xf]  ;;  %v4247_v30 = vld [vmem:[%s3981_s26 + $0x88] sm:$0xff] }
  0x45   : > { %v418_v61 = vunpack.c.3.s8 %v4126_v51  ;;  %v3240_v62 = vor.u32 %v3576_v58, %v3239_v53  ;;  %v3112_v48 = vor.u32 %v3542_v39, %v3109_v52  ;;  %v490_v0 = vcvt.s32.f32 %v410_v35  ;;  %v3479_v35 = vld [vmem:[%s5188_s1 + $0x4] sm:$0xf]  ;;  %v2857_v39 = vld [vmem:[%s5188_s1 + $0xc] sm:$0xf0]  ;;  %v3533_v52 = vld [vmem:[%s5188_s1 + $0x1b4] sm:$0xf] }
  0x46   : > { %v495_v1 = vcvt.s32.f32 %v415_v54  ;;  %v491_v50 = vcvt.s32.f32 %v411_v55  ;;  %v496_v2 = vcvt.s32.f32 %v416_v56  ;;  %v492_v3 = vcvt.s32.f32 %v412_v57  ;;  %v3073_v53 = vld [vmem:[%s5188_s1 + $0x1bc] sm:$0xf0]  ;;  %v3530_v56 = vld [vmem:[%s5188_s1 + $0x19c] sm:$0xf]  ;;  %v3061_v57 = vld [vmem:[%s5188_s1 + $0x1a4] sm:$0xf0] }
  0x47   : > { %1614 = vmatpush.bf16.msrb.mxu1 %v2872_v36  ;;  %1707 = vmatpush.bf16.msrb.mxu3 %v3124_v38  ;;  %v497_v51 = vcvt.s32.f32 %v417_v59  ;;  %v493_v4 = vcvt.s32.f32 %v413_v60  ;;  %v498_v5 = vcvt.s32.f32 %v418_v61  ;;  %v3100_v14 = vor.u32 %v3539_v49, %v3097_v63 }
  0x48   : > { %1663 = vmatpush.bf16.msrb.mxu2 %v2968_v31  ;;  %1566 = vmatpush.bf16.msrb.mxu0 %v3240_v62  ;;  %v4224_v17 = vpack.c.bf16 %v495_v1, %v490_v0  ;;  %v4226_v18 = vpack.c.bf16 %v496_v2, %v491_v50  ;;  %v3304_v25 = vor.u32 %v3590_v15, %v3301_v16  ;;  %v4250_v31 = vld [vmem:[%s3981_s26 + $0x90] sm:$0xff]  ;;  %v420_v58 = vunpack.c.0.s8 %v4233_v26  ;;  %v3527_v15 = vld [vmem:[%s5188_s1 + $0x184] sm:$0xf] }
  0x49   : > { %v4228_v19 = vpack.c.bf16 %v497_v51, %v492_v3  ;;  %v4230_v20 = vpack.c.bf16 %v498_v5, %v493_v4  ;;  %v3088_v32 = vor.u32 %v3536_v27, %v3085_v28  ;;  %v2956_v38 = vor.u32 %v3503_v33, %v2953_v34  ;;  %v3049_v16 = vld [vmem:[%s5188_s1 + $0x18c] sm:$0xf0] }
  0x4a   : > { %v1358_v36 = vand.u32 %v3304_v25, %v3970_v37  ;;  %v2860_v54 = vor.u32 %v3479_v35, %v2857_v39  ;;  %v3076_v55 = vor.u32 %v3533_v52, %v3073_v53  ;;  %v425_v59 = vunpack.c.1.s8 %v4233_v26  ;;  %v2947_v34 = vld [vmem:[%s5188_s1 + $0xb0] sm:$0xf]  ;;  %v3502_v35 = vld [vmem:[%s5188_s1 + $0xb8] sm:$0xf0]  ;;  %v3229_v39 = vld [vmem:[%s5188_s1 + $0x2f4] sm:$0xf0] }
  0x4b   : > { %1708 = vmatpush.bf16.msrb.mxu3 %v3112_v48  ;;  %5212 = vst [vmem:[#allocation7_spill] sm:$0xff] %v4228_v19  ;;  %v421_v60 = vunpack.c.0.s8 %v4244_v29  ;;  %v426_v61 = vunpack.c.1.s8 %v4244_v29  ;;  %v422_v62 = vunpack.c.0.s8 %v4247_v30  ;;  %v427_v48 = vunpack.c.1.s8 %v4247_v30 }
  0x4c   : > { %1664 = vmatpush.bf16.msrb.mxu2 %v2956_v38  ;;  %v423_v49 = vunpack.c.0.s8 %v4250_v31  ;;  %v428_v63 = vunpack.c.1.s8 %v4250_v31  ;;  %1615 = vmatpush.bf16.msrb.mxu1 %v2860_v54  ;;  %v3064_v0 = vor.u32 %v3530_v56, %v3061_v57  ;;  %v500_v1 = vcvt.s32.f32 %v420_v58 }
  0x4d   : > { %1381 = vmatmul.bf16.gmra.mxu0 %v4076_v6  ;;  %v505_v50 = vcvt.s32.f32 %v425_v59  ;;  %v501_v2 = vcvt.s32.f32 %v421_v60  ;;  %v506_v3 = vcvt.s32.f32 %v426_v61  ;;  %v502_v51 = vcvt.s32.f32 %v422_v62 }
  0x4e   : > { %1430 = vmatmul.bf16.gmra.mxu1 %v4078_v7  ;;  %v507_v4 = vcvt.s32.f32 %v427_v48  ;;  %v503_v5 = vcvt.s32.f32 %v423_v49  ;;  %v3052_v28 = vor.u32 %v3527_v15, %v3049_v16  ;;  %v2948_v38 = vor.u32 %v3502_v35, %v2947_v34  ;;  %v4353_v34 = vld [vmem:[%s5189_s2] sm:$0x7] }
  0x4f   : > { %1479 = vmatmul.bf16.gmra.mxu2 %v4080_v10  ;;  %1709 = vmatpush.bf16.msrb.mxu3 %v3100_v14  ;;  %v508_v14 = vcvt.s32.f32 %v428_v63  ;;  %v4293_v25 = vpack.c.bf16 %v505_v50, %v500_v1  ;;  %v4295_v27 = vpack.c.bf16 %v506_v3, %v501_v2  ;;  %v430_v53 = vunpack.c.2.s8 %v4233_v26  ;;  %v2935_v3 = vld [vmem:[%s5188_s1 + $0x98] sm:$0xf] }
  0x50   : > { %1528 = vmatmul.bf16.gmra.mxu3 %v4082_v13  ;;  %1806 = vmatpush.bf16.msra.mxu1 %v1358_v36  ;;  %v3572_v36 = vld [vmem:[%s5188_s1 + $0x2ec] sm:$0xf]  ;;  %v435_v54 = vunpack.c.3.s8 %v4233_v26  ;;  %v436_v56 = vunpack.c.3.s8 %v4244_v29  ;;  %v432_v57 = vunpack.c.2.s8 %v4247_v30  ;;  %v437_v58 = vunpack.c.3.s8 %v4247_v30 }
  0x51   : > { %5213 = vst [vmem:[#allocation8_spill] sm:$0xff] %v4295_v27  ;;  %v4299_v33 = vpack.c.bf16 %v508_v14, %v503_v5  ;;  %v3232_v52 = vor.u32 %v3572_v36, %v3229_v39  ;;  %1853 = vmatpush.bf16.msra.mxu2 %v2948_v38  ;;  %v433_v59 = vunpack.c.2.s8 %v4250_v31  ;;  %v438_v60 = vunpack.c.3.s8 %v4250_v31  ;;  %v344_v31 = vld [vmem:[%s3981_s26 + $0x20] sm:$0xff]  ;;  %v3289_v39 = vld [vmem:[%s5188_s1 + $0x36c] sm:$0xf0] }
  0x52   : > { %v510_v61 = vcvt.s32.f32 %v430_v53  ;;  %v515_v62 = vcvt.s32.f32 %v435_v54  ;;  %v516_v49 = vcvt.s32.f32 %v436_v56  ;;  %v512_v26 = vcvt.s32.f32 %v432_v57  ;;  %v3217_v14 = vld [vmem:[%s5188_s1 + $0x2dc] sm:$0xf0]  ;;  %v3587_v38 = vld [vmem:[%s5188_s1 + $0x364] sm:$0xf] }
  0x53   : > { %1710 = vmatpush.bf16.msrb.mxu3 %v3088_v32  ;;  %v4297_v32 = vpack.c.bf16 %v507_v4, %v502_v51  ;;  %1755 = vmatpush.bf16.msra.mxu0 %v3232_v52  ;;  %v517_v63 = vcvt.s32.f32 %v437_v58  ;;  %v518_v1 = vcvt.s32.f32 %v438_v60  ;;  %v3499_v51 = vld [vmem:[%s5188_s1 + $0xa0] sm:$0xf0]  ;;  %v3569_v4 = vld [vmem:[%s5188_s1 + $0x2d4] sm:$0xf]  ;;  %v364_v16 = vunpack.c.0.s8 %v344_v31  ;;  %v3496_v60 = vld [vmem:[%s5188_s1 + $0x88] sm:$0xf0] }
  0x54   : > { %v2936_v5 = vor.u32 %v3499_v51, %v2935_v3  ;;  %v3220_v15 = vor.u32 %v3569_v4, %v3217_v14  ;;  %v3292_v52 = vor.u32 %v3587_v38, %v3289_v39  ;;  %v4362_v53 = vperm.slane %v4353_v34, 0 }
  0x55   : > { %5214 = vst [vmem:[#allocation9_spill] sm:$0xff] %v4297_v32  ;;  %v4329_v2 = vpack.c.bf16 %v517_v63, %v512_v26  ;;  %v444_v35 = vcvt.s32.f32 %v364_v16 }
  0x56   : > { %1854 = vmatpush.bf16.msra.mxu2 %v2936_v5  ;;  %1807 = vmatpush.bf16.msra.mxu1 %v3292_v52 }
  0x57   : > { %1711 = vmatpush.bf16.msrb.mxu3 %v3076_v55  ;;  %v431_v55 = vunpack.c.2.s8 %v4244_v29  ;;  %v4325_v29 = vpack.c.bf16 %v515_v62, %v510_v61  ;;  %1756 = vmatpush.bf16.msra.mxu0 %v3220_v15  ;;  %v3566_v61 = vld [vmem:[%s5188_s1 + $0x2bc] sm:$0xf] }
  0x59   : > { %v511_v48 = vcvt.s32.f32 %v431_v55 }
  0x5b   : > { %1712 = vmatpush.bf16.msrb.mxu3 %v3064_v0  ;;  %v513_v0 = vcvt.s32.f32 %v433_v59  ;;  %v4327_v50 = vpack.c.bf16 %v516_v49, %v511_v48  ;;  %v2923_v59 = vld [vmem:[%s5188_s1 + $0x80] sm:$0xf]  ;;  %v3205_v48 = vld [vmem:[%s5188_s1 + $0x2c4] sm:$0xf0] }
  0x5c   : > { %v2924_v62 = vor.u32 %v3496_v60, %v2923_v59  ;;  %v3208_v49 = vor.u32 %v3566_v61, %v3205_v48  ;;  %v3584_v59 = vld [vmem:[%s5188_s1 + $0x34c] sm:$0xf]  ;;  %v3277_v60 = vld [vmem:[%s5188_s1 + $0x354] sm:$0xf0]  ;;  %v3493_v48 = vld [vmem:[%s5188_s1 + $0x70] sm:$0xf0] }
  0x5d   : > { %1386 = vmatmul.bf16.gmra.mxu0 %v4106_v44  ;;  %v4331_v30 = vpack.c.bf16 %v518_v1, %v513_v0  ;;  %v374_v0 = vunpack.c.2.s8 %v344_v31  ;;  %v379_v1 = vunpack.c.3.s8 %v344_v31  ;;  %v3280_v61 = vor.u32 %v3584_v59, %v3277_v60 }
  0x5e   : > { %1435 = vmatmul.bf16.gmra.mxu1 %v4108_v45  ;;  %1855 = vmatpush.bf16.msra.mxu2 %v2924_v62  ;;  %v2911_v62 = vld [vmem:[%s5188_s1 + $0x68] sm:$0xf] }
  0x5f   : > { %1484 = vmatmul.bf16.gmra.mxu2 %v4110_v46  ;;  %1713 = vmatpush.bf16.msrb.mxu3 %v3052_v28  ;;  %5215 = vst [vmem:[#allocation10_spill] sm:$0xff] %v4331_v30  ;;  %v369_v28 = vunpack.c.1.s8 %v344_v31  ;;  %v454_v16 = vcvt.s32.f32 %v374_v0 }
  0x60   : > { %1533 = vmatmul.bf16.gmra.mxu3 %v4112_v47  ;;  %1757 = vmatpush.bf16.msra.mxu0 %v3208_v49  ;;  %v3563_v49 = vld [vmem:[%s5188_s1 + $0x2a4] sm:$0xf] }
  0x61   : > { %v449_v36 = vcvt.s32.f32 %v369_v28  ;;  %v459_v28 = vcvt.s32.f32 %v379_v1  ;;  %1808 = vmatpush.bf16.msra.mxu1 %v3280_v61 }
  0x63   : > { %v4364_v54 = vpack.c.bf16 %v449_v36, %v444_v35  ;;  %v4387_v38 = vpack.c.bf16 %v459_v28, %v454_v16 }
  0x6d   : > { %1391 = vmatmul.bf16.gmra.mxu0 %v4156_v21 }
  0x6e   : > { %1440 = vmatmul.bf16.gmra.mxu1 %v4158_v22 }
  0x6f   : > { %1489 = vmatmul.bf16.gmra.mxu2 %v4160_v23 }
  0x70   : > { %1538 = vmatmul.bf16.gmra.mxu3 %v4162_v24 }
  0x7d   : > { %1396 = vmatmul.bf16.gmra.mxu0 %v4224_v17 }
  0x7e   : > { %1445 = vmatmul.bf16.gmra.mxu1 %v4226_v18 }
  0x7f   : > { %1494 = vmatmul.bf16.gmra.mxu2 %v4228_v19 }
  0x80   : > { %1543 = vmatmul.bf16.gmra.mxu3 %v4230_v20 }
  0x8d   : > { %1401 = vmatmul.bf16.gmra.mxu0 %v4293_v25 }
  0x8e   : > { %1450 = vmatmul.bf16.gmra.mxu1 %v4295_v27 }
  0x8f   : > { %1499 = vmatmul.bf16.gmra.mxu2 %v4297_v32 }
  0x90   : > { %1548 = vmatmul.bf16.gmra.mxu3 %v4299_v33 }
  0x9d   : > { %1406 = vmatmul.bf16.gmra.mxu0 %v4325_v29 }
  0x9e   : > { %1455 = vmatmul.bf16.gmra.mxu1 %v4327_v50 }
  0x9f   : > { %1504 = vmatmul.bf16.gmra.mxu2 %v4329_v2 }
  0xa0   : > { %1553 = vmatmul.bf16.gmra.mxu3 %v4331_v30 }
  0xaa   : > { %v1372_v55 = vpop.f32.mrf.mxu0 }
  0xab   : > { %v1421_v56 = vpop.f32.mrf.mxu1  ;;  %v1373_v57 = vadd.f32 %v1372_v55, %v4362_v53 }
  0xad   : > { %v1422_v58 = vadd.f32 %v1421_v56, %v1373_v57  ;;  %3309 = vmatmul.msk.bf16.vlgmr.msrb.gmra.mxu0 %vm1325_vm2, %v4364_v54 }
  0xae   : > { %1616 = vmatmul.bf16.vlgmr.msrb.gmra.mxu1 %v4012_v8 }
  0xaf   : > { %1665 = vmatmul.bf16.vlgmr.msrb.gmra.mxu2 %v4014_v9 }
  0xb0   : > { %1714 = vmatmul.bf16.vlgmr.msrb.gmra.mxu3 %v4016_v11 }
  0xb2   : > { %v1470_v26 = vpop.f32.mrf.mxu2  ;;  %v1374_v51 = vpop.f32.mrf.mxu0 }
  0xb3   : > { %v1519_v63 = vpop.f32.mrf.mxu3  ;;  %v1471_v3 = vadd.f32 %v1470_v26, %v1422_v58  ;;  %v1423_v4 = vpop.f32.mrf.mxu1  ;;  %v1375_v5 = vadd.f32 %v1374_v51, %v4362_v53  ;;  %v349_v58 = vld [vmem:[%s3981_s26 + $0x48] sm:$0xff]  ;;  %v2912_v26 = vor.u32 %v3493_v48, %v2911_v62 }
  0xb4   : > { %v384_v51 = vunpack.c.0.s8 %v349_v58 }
  0xb5   : > { %v4385_v14 = vadd.f32 %v1519_v63, %v1471_v3  ;;  %v1424_v15 = vadd.f32 %v1423_v4, %v1375_v5  ;;  %v3193_v63 = vld [vmem:[%s5188_s1 + $0x2ac] sm:$0xf0]  ;;  %v389_v4 = vunpack.c.1.s8 %v349_v58  ;;  %1856 = vmatpush.bf16.msra.mxu2 %v2912_v26 }
  0xb6   : > { %v3196_v0 = vor.u32 %v3563_v49, %v3193_v63  ;;  %v2899_v26 = vld [vmem:[%s5188_s1 + $0x50] sm:$0xf]  ;;  %v3490_v63 = vld [vmem:[%s5188_s1 + $0x58] sm:$0xf0] }
  0xb8   : > { %1758 = vmatpush.bf16.msra.mxu0 %v3196_v0  ;;  %v3560_v0 = vld [vmem:[%s5188_s1 + $0x28c] sm:$0xf] }
  0xba   : > { %v1472_v35 = vpop.f32.mrf.mxu2  ;;  %v1377_v52 = vpop.f32.mrf.mxu0 }
  0xbb   : > { %v1521_v36 = vpop.f32.mrf.mxu3  ;;  %v1473_v39 = vadd.f32 %v1472_v35, %v1424_v15  ;;  %v1426_v31 = vpop.f32.mrf.mxu1  ;;  %v1378_v55 = vadd.f32 %v1377_v52, %v4362_v53  ;;  %v469_v52 = vcvt.s32.f32 %v389_v4 }
  0xbd   : > { %v4390_v56 = vadd.f32 %v1521_v36, %v1473_v39  ;;  %v1427_v57 = vadd.f32 %v1426_v31, %v1378_v55  ;;  %3310 = vmatmul.msk.bf16.gmra.mxu0 %vm1325_vm2, %v4387_v38  ;;  %v464_v39 = vcvt.s32.f32 %v384_v51 }
  0xbe   : > { %1621 = vmatmul.bf16.gmra.mxu1 %v4048_v40 }
  0xbf   : > { %1670 = vmatmul.bf16.gmra.mxu2 %v4050_v41  ;;  %v4419_v59 = vpack.c.bf16 %v469_v52, %v464_v39 }
  0xc0   : > { %1719 = vmatmul.bf16.gmra.mxu3 %v4052_v42  ;;  %v3514_v42 = vld [vmem:[%s5188_s1 + $0x118] sm:$0xf0] }
  0xc2   : > { %v1475_v1 = vpop.f32.mrf.mxu2  ;;  %v1379_v15 = vpop.f32.mrf.mxu0 }
  0xc3   : > { %v1524_v3 = vpop.f32.mrf.mxu3  ;;  %v1476_v5 = vadd.f32 %v1475_v1, %v1427_v57  ;;  %v1428_v16 = vpop.f32.mrf.mxu1  ;;  %v1380_v28 = vadd.f32 %v1379_v15, %v4362_v53  ;;  %v2900_v1 = vor.u32 %v3490_v63, %v2899_v26  ;;  %v394_v15 = vunpack.c.2.s8 %v349_v58 }
  0xc5   : > { %v4417_v35 = vadd.f32 %v1524_v3, %v1476_v5  ;;  %v1429_v36 = vadd.f32 %v1428_v16, %v1380_v28  ;;  %v3181_v3 = vld [vmem:[%s5188_s1 + $0x294] sm:$0xf0]  ;;  %v399_v16 = vunpack.c.3.s8 %v349_v58  ;;  %1857 = vmatpush.bf16.msra.mxu2 %v2900_v1  ;;  %v474_v58 = vcvt.s32.f32 %v394_v15  ;;  %v4459_v15 = vld [vmem:[%s3981_s26 + $0x70] sm:$0xff] }
  0xc6   : > { %v3184_v51 = vor.u32 %v3560_v0, %v3181_v3 }
  0xc8   : > { %1759 = vmatpush.bf16.msra.mxu0 %v3184_v51 }
  0xca   : > { %v1477_v31 = vpop.f32.mrf.mxu2  ;;  %v1382_v61 = vpop.f32.mrf.mxu0 }
  0xcb   : > { %v1526_v55 = vpop.f32.mrf.mxu3  ;;  %v1478_v60 = vadd.f32 %v1477_v31, %v1429_v36  ;;  %v1431_v62 = vpop.f32.mrf.mxu1  ;;  %v1383_v48 = vadd.f32 %v1382_v61, %v4362_v53 }
  0xcd   : > { %v4422_v57 = vadd.f32 %v1526_v55, %v1478_v60  ;;  %v1432_v49 = vadd.f32 %v1431_v62, %v1383_v48  ;;  %3311 = vmatmul.msk.bf16.gmra.mxu0 %vm1325_vm2, %v4419_v59  ;;  %v3581_v55 = vld [vmem:[%s5188_s1 + $0x334] sm:$0xf]  ;;  %v3265_v60 = vld [vmem:[%s5188_s1 + $0x33c] sm:$0xf0]  ;;  %v479_v62 = vcvt.s32.f32 %v399_v16  ;;  %v2887_v16 = vld [vmem:[%s5188_s1 + $0x38] sm:$0xf] }
  0xce   : > { %1626 = vmatmul.bf16.gmra.mxu1 %v4076_v6  ;;  %v3268_v48 = vor.u32 %v3581_v55, %v3265_v60 }
  0xcf   : > { %1675 = vmatmul.bf16.gmra.mxu2 %v4078_v7  ;;  %v4450_v63 = vpack.c.bf16 %v479_v62, %v474_v58  ;;  %v404_v58 = vunpack.c.0.s8 %v4459_v15  ;;  %v409_v62 = vunpack.c.1.s8 %v4459_v15 }
  0xd0   : > { %1724 = vmatmul.bf16.gmra.mxu3 %v4080_v10  ;;  %1809 = vmatpush.bf16.msra.mxu1 %v3268_v48  ;;  %v2995_v10 = vld [vmem:[%s5188_s1 + $0x110] sm:$0xf] }
  0xd2   : > { %v1480_v4 = vpop.f32.mrf.mxu2  ;;  %v1384_v36 = vpop.f32.mrf.mxu0 }
  0xd3   : > { %v1529_v5 = vpop.f32.mrf.mxu3  ;;  %v1481_v28 = vadd.f32 %v1480_v4, %v1432_v49  ;;  %v1433_v39 = vpop.f32.mrf.mxu1  ;;  %v1385_v52 = vadd.f32 %v1384_v36, %v4362_v53  ;;  %v3557_v36 = vld [vmem:[%s5188_s1 + $0x274] sm:$0xf] }
  0xd5   : > { %v4442_v31 = vadd.f32 %v1529_v5, %v1481_v28  ;;  %v1434_v61 = vadd.f32 %v1433_v39, %v1385_v52  ;;  %v3487_v28 = vld [vmem:[%s5188_s1 + $0x40] sm:$0xf0]  ;;  %v3169_v52 = vld [vmem:[%s5188_s1 + $0x27c] sm:$0xf0] }
  0xd6   : > { %v2888_v39 = vor.u32 %v3487_v28, %v2887_v16  ;;  %v3172_v55 = vor.u32 %v3557_v36, %v3169_v52  ;;  %v489_v16 = vcvt.s32.f32 %v409_v62  ;;  %v3578_v28 = vld [vmem:[%s5188_s1 + $0x31c] sm:$0xf]  ;;  %v3253_v36 = vld [vmem:[%s5188_s1 + $0x324] sm:$0xf0] }
  0xd8   : > { %1858 = vmatpush.bf16.msra.mxu2 %v2888_v39  ;;  %1760 = vmatpush.bf16.msra.mxu0 %v3172_v55  ;;  %v3256_v39 = vor.u32 %v3578_v28, %v3253_v36  ;;  %v3554_v28 = vld [vmem:[%s5188_s1 + $0x25c] sm:$0xf] }
  0xda   : > { %v1482_v49 = vpop.f32.mrf.mxu2  ;;  %v1387_v1 = vpop.f32.mrf.mxu0  ;;  %1810 = vmatpush.bf16.msra.mxu1 %v3256_v39  ;;  %v3157_v39 = vld [vmem:[%s5188_s1 + $0x264] sm:$0xf0] }
  0xdb   : > { %v1531_v26 = vpop.f32.mrf.mxu3  ;;  %v1483_v0 = vadd.f32 %v1482_v49, %v1434_v61  ;;  %v1436_v3 = vpop.f32.mrf.mxu1  ;;  %v1388_v51 = vadd.f32 %v1387_v1, %v4362_v53 }
  0xdd   : > { %v4453_v4 = vadd.f32 %v1531_v26, %v1483_v0  ;;  %v1437_v5 = vadd.f32 %v1436_v3, %v1388_v51  ;;  %3312 = vmatmul.msk.bf16.gmra.mxu0 %vm1325_vm2, %v4450_v63  ;;  %v484_v51 = vcvt.s32.f32 %v404_v58 }
  0xde   : > { %1631 = vmatmul.bf16.gmra.mxu1 %v4106_v44 }
  0xdf   : > { %1680 = vmatmul.bf16.gmra.mxu2 %v4108_v45  ;;  %v4486_v55 = vpack.c.bf16 %v489_v16, %v484_v51  ;;  %v2875_v51 = vld [vmem:[%s5188_s1 + $0x20] sm:$0xf]  ;;  %v3484_v16 = vld [vmem:[%s5188_s1 + $0x28] sm:$0xf0] }
  0xe0   : > { %1729 = vmatmul.bf16.gmra.mxu3 %v4110_v46  ;;  %v2876_v36 = vor.u32 %v3484_v16, %v2875_v51  ;;  %v3520_v46 = vld [vmem:[%s5188_s1 + $0x148] sm:$0xf0] }
  0xe2   : > { %v1485_v60 = vpop.f32.mrf.mxu2  ;;  %v1389_v49 = vpop.f32.mrf.mxu0  ;;  %1859 = vmatpush.bf16.msra.mxu2 %v2876_v36 }
  0xe3   : > { %v1534_v61 = vpop.f32.mrf.mxu3  ;;  %v1486_v48 = vadd.f32 %v1485_v60, %v1437_v5  ;;  %v1438_v26 = vpop.f32.mrf.mxu1  ;;  %v1390_v0 = vadd.f32 %v1389_v49, %v4362_v53  ;;  %v3043_v49 = vld [vmem:[%s5188_s1 + $0x170] sm:$0xf] }
  0xe5   : > { %v4478_v1 = vadd.f32 %v1534_v61, %v1486_v48  ;;  %v1439_v3 = vadd.f32 %v1438_v26, %v1390_v0  ;;  %v3526_v26 = vld [vmem:[%s5188_s1 + $0x178] sm:$0xf0] }
  0xea   : > { %v1487_v5 = vpop.f32.mrf.mxu2  ;;  %v1392_v61 = vpop.f32.mrf.mxu0 }
  0xeb   : > { %v1536_v52 = vpop.f32.mrf.mxu3  ;;  %v1488_v60 = vadd.f32 %v1487_v5, %v1439_v3  ;;  %v1441_v48 = vpop.f32.mrf.mxu1  ;;  %v1393_v58 = vadd.f32 %v1392_v61, %v4362_v53  ;;  %v3044_v3 = vor.u32 %v3526_v26, %v3043_v49  ;;  %v3160_v5 = vor.u32 %v3554_v28, %v3157_v39 }
  0xec   : > { %v419_v49 = vunpack.c.3.s8 %v4459_v15 }
  0xed   : > { %v4489_v62 = vadd.f32 %v1536_v52, %v1488_v60  ;;  %v1442_v0 = vadd.f32 %v1441_v48, %v1393_v58  ;;  %3313 = vmatmul.msk.bf16.gmra.mxu0 %vm1325_vm2, %v4486_v55  ;;  %1902 = vmatpush.bf16.msra.mxu3 %v3044_v3  ;;  %v3031_v52 = vld [vmem:[%s5188_s1 + $0x158] sm:$0xf]  ;;  %v3523_v60 = vld [vmem:[%s5188_s1 + $0x160] sm:$0xf0]  ;;  %v414_v58 = vunpack.c.2.s8 %v4459_v15 }
  0xee   : > { %1636 = vmatmul.bf16.gmra.mxu1 %v4156_v21  ;;  %v3032_v26 = vor.u32 %v3523_v60, %v3031_v52  ;;  %1761 = vmatpush.bf16.msra.mxu0 %v3160_v5  ;;  %v499_v52 = vcvt.s32.f32 %v419_v49  ;;  %v3307_v5 = vld [vmem:[%s5188_s1 + $0x380] sm:$0xf]  ;;  %v3592_v60 = vld [vmem:[%s5188_s1 + $0x388] sm:$0x70] }
  0xef   : > { %1685 = vmatmul.bf16.gmra.mxu2 %v4158_v22  ;;  %v494_v36 = vcvt.s32.f32 %v414_v58 }
  0xf0   : > { %1734 = vmatmul.bf16.gmra.mxu3 %v4160_v23  ;;  %v3019_v23 = vld [vmem:[%s5188_s1 + $0x140] sm:$0xf] }
  0xf1   : > { %1903 = vmatpush.bf16.msra.mxu3 %v3032_v26  ;;  %v3308_v26 = vor.u32 %v3592_v60, %v3307_v5  ;;  %v3241_v5 = vld [vmem:[%s5188_s1 + $0x30c] sm:$0xf0]  ;;  %v2996_v60 = vor.u32 %v3514_v42, %v2995_v10 }
  0xf2   : > { %v1490_v61 = vpop.f32.mrf.mxu2  ;;  %v1394_v51 = vpop.f32.mrf.mxu0 }
  0xf3   : > { %v1539_v48 = vpop.f32.mrf.mxu3  ;;  %v1491_v3 = vadd.f32 %v1490_v61, %v1442_v0  ;;  %v1443_v16 = vpop.f32.mrf.mxu1  ;;  %v1395_v28 = vadd.f32 %v1394_v51, %v4362_v53  ;;  %v3020_v0 = vor.u32 %v3520_v46, %v3019_v23  ;;  %v3007_v61 = vld [vmem:[%s5188_s1 + $0x128] sm:$0xf]  ;;  %v4543_v23 = vpack.c.bf16 %v499_v52, %v494_v36  ;;  %v3575_v52 = vld [vmem:[%s5188_s1 + $0x304] sm:$0xf] }
  0xf5   : > { %v4523_v39 = vadd.f32 %v1539_v48, %v1491_v3  ;;  %v1444_v15 = vadd.f32 %v1443_v16, %v1395_v28  ;;  %1904 = vmatpush.bf16.msra.mxu3 %v3020_v0  ;;  %v3517_v48 = vld [vmem:[%s5188_s1 + $0x130] sm:$0xf0] }
  0xf6   : > { %v3008_v49 = vor.u32 %v3517_v48, %v3007_v61  ;;  %v1361_v61 = vand.u32 %v3308_v26, %v3970_v37  ;;  %v3244_v48 = vor.u32 %v3575_v52, %v3241_v5  ;;  %v3145_v37 = vld [vmem:[%s5188_s1 + $0x24c] sm:$0xf0]  ;;  %v2983_v26 = vld [vmem:[%s5188_s1 + $0xf8] sm:$0xf] }
  0xf8   : > { %1811 = vmatpush.bf16.msra.mxu1 %v3244_v48 }
  0xf9   : > { %1905 = vmatpush.bf16.msra.mxu3 %v3008_v49  ;;  %v3551_v49 = vld [vmem:[%s5188_s1 + $0x244] sm:$0xf] }
  0xfa   : > { %v1492_v58 = vpop.f32.mrf.mxu2  ;;  %v1397_v51 = vpop.f32.mrf.mxu0  ;;  %v3148_v10 = vor.u32 %v3551_v49, %v3145_v37  ;;  %v2971_v37 = vld [vmem:[%s5188_s1 + $0xe0] sm:$0xf] }
  0xfb   : > { %v1541_v46 = vpop.f32.mrf.mxu3  ;;  %v1493_v3 = vadd.f32 %v1492_v58, %v1444_v15  ;;  %v1446_v16 = vpop.f32.mrf.mxu1  ;;  %v1398_v28 = vadd.f32 %v1397_v51, %v4362_v53  ;;  %v4558_v15 = vld [vmem:[%s3981_s26 + $0x98] sm:$0xff]  ;;  %v2863_v58 = vld [vmem:[%s5188_s1 + $0x8] sm:$0xf] }
  0xfc   : > { %v429_v52 = vunpack.c.1.s8 %v4558_v15  ;;  %1762 = vmatpush.bf16.msra.mxu0 %v3148_v10  ;;  %v3505_v10 = vld [vmem:[%s5188_s1 + $0xd0] sm:$0xf0] }
  0xfd   : > { %v4546_v0 = vadd.f32 %v1541_v46, %v1493_v3  ;;  %v1447_v36 = vadd.f32 %v1446_v16, %v1398_v28  ;;  %3314 = vmatmul.msk.bf16.gmra.mxu0 %vm1325_vm2, %v4543_v23  ;;  %v3481_v46 = vld [vmem:[%s5188_s1 + $0x10] sm:$0xf0]  ;;  %1906 = vmatpush.bf16.msra.mxu3 %v2996_v60  ;;  %v3511_v3 = vld [vmem:[%s5188_s1 + $0x100] sm:$0xf0]  ;;  %v424_v28 = vunpack.c.0.s8 %v4558_v15 }
  0xfe   : > { %1641 = vmatmul.bf16.gmra.mxu1 %v4224_v17  ;;  %v2864_v42 = vor.u32 %v3481_v46, %v2863_v58  ;;  %v2984_v5 = vor.u32 %v3511_v3, %v2983_v26 }
  0xff   : > { %1690 = vmatmul.bf16.gmra.mxu2 %v4226_v18  ;;  %v504_v26 = vcvt.s32.f32 %v424_v28 }
 0x100   : > { %1739 = vmatmul.bf16.gmra.mxu3 %v4228_v19  ;;  %1860 = vmatpush.bf16.msra.mxu2 %v2864_v42  ;;  %v3508_v19 = vld [vmem:[%s5188_s1 + $0xe8] sm:$0xf0] }
 0x101   : > { %1907 = vmatpush.bf16.msra.mxu3 %v2984_v5  ;;  %v2972_v3 = vor.u32 %v3508_v19, %v2971_v37 }
 0x102   : > { %v1495_v51 = vpop.f32.mrf.mxu2  ;;  %v1399_v58 = vpop.f32.mrf.mxu0 }
 0x103   : > { %v1544_v16 = vpop.f32.mrf.mxu3  ;;  %v1496_v60 = vadd.f32 %v1495_v51, %v1447_v36  ;;  %v1448_v48 = vpop.f32.mrf.mxu1  ;;  %v1400_v46 = vadd.f32 %v1399_v58, %v4362_v53  ;;  %v509_v36 = vcvt.s32.f32 %v429_v52 }
 0x104   : > { %2051 = vmatpush.bf16.msrb.mxu2 %v1361_v61  ;;  %v2959_v61 = vld [vmem:[%s5188_s1 + $0xc8] sm:$0xf] }
 0x105   : > { %v4590_v49 = vadd.f32 %v1544_v16, %v1496_v60  ;;  %v1449_v42 = vadd.f32 %v1448_v48, %v1400_v46  ;;  %1908 = vmatpush.bf16.msra.mxu3 %v2972_v3  ;;  %v4604_v5 = vpack.c.bf16 %v509_v36, %v504_v26  ;;  %v2960_v60 = vor.u32 %v3505_v10, %v2959_v61  ;;  %v3139_v46 = vld [vmem:[%s5188_s1 + $0x230] sm:$0xf] }
 0x106   : > { %v434_v36 = vunpack.c.2.s8 %v4558_v15  ;;  %v439_v3 = vunpack.c.3.s8 %v4558_v15 }
 0x109   : > { %1909 = vmatpush.bf16.msra.mxu3 %v2960_v60 }
 0x10a   : > { %v1497_v51 = vpop.f32.mrf.mxu2  ;;  %v1402_v11 = vpop.f32.mrf.mxu0 }
 0x10b   : > { %v1546_v16 = vpop.f32.mrf.mxu3  ;;  %v1498_v58 = vadd.f32 %v1497_v51, %v1449_v42  ;;  %v1451_v48 = vpop.f32.mrf.mxu1  ;;  %v1403_v28 = vadd.f32 %v1402_v11, %v4362_v53  ;;  %v3550_v11 = vld [vmem:[%s5188_s1 + $0x238] sm:$0xf0] }
 0x10c   : > { %v3140_v37 = vor.u32 %v3550_v11, %v3139_v46  ;;  %v514_v46 = vcvt.s32.f32 %v434_v36  ;;  %v519_v11 = vcvt.s32.f32 %v439_v3  ;;  %v3127_v36 = vld [vmem:[%s5188_s1 + $0x218] sm:$0xf]  ;;  %v3547_v3 = vld [vmem:[%s5188_s1 + $0x220] sm:$0xf0] }
 0x10d   : > { %v4607_v19 = vadd.f32 %v1546_v16, %v1498_v58  ;;  %v1452_v52 = vadd.f32 %v1451_v48, %v1403_v28  ;;  %3315 = vmatmul.msk.bf16.gmra.mxu0 %vm1325_vm2, %v4604_v5  ;;  %v3235_v58 = vld [vmem:[%s5188_s1 + $0x2f0] sm:$0xf]  ;;  %v3574_v48 = vld [vmem:[%s5188_s1 + $0x2f8] sm:$0xf0] }
 0x10e   : > { %1646 = vmatmul.bf16.gmra.mxu1 %v4293_v25  ;;  %1951 = vmatpush.bf16.msrb.mxu0 %v3140_v37  ;;  %v3236_v15 = vor.u32 %v3574_v48, %v3235_v58 }
 0x10f   : > { %1695 = vmatmul.bf16.gmra.mxu2 %v4295_v27 }
 0x110   : > { %1744 = vmatmul.bf16.gmra.mxu3 %v4297_v32  ;;  %2000 = vmatpush.bf16.msrb.mxu1 %v3236_v15  ;;  %v3223_v15 = vld [vmem:[%s5188_s1 + $0x2d8] sm:$0xf] }
 0x112   : > { %v1500_v42 = vpop.f32.mrf.mxu2  ;;  %v1404_v10 = vpop.f32.mrf.mxu0 }
 0x113   : > { %v1549_v26 = vpop.f32.mrf.mxu3  ;;  %v1501_v61 = vadd.f32 %v1500_v42, %v1452_v52  ;;  %v1453_v51 = vpop.f32.mrf.mxu1  ;;  %v1405_v16 = vadd.f32 %v1404_v10, %v4362_v53  ;;  %v4631_v42 = vpack.c.bf16 %v519_v11, %v514_v46 }
 0x115   : > { %v4623_v60 = vadd.f32 %v1549_v26, %v1501_v61  ;;  %v1454_v28 = vadd.f32 %v1453_v51, %v1405_v16  ;;  %v3128_v51 = vor.u32 %v3547_v3, %v3127_v36 }
 0x117   : > { %1952 = vmatpush.bf16.msrb.mxu0 %v3128_v51 }
 0x11a   : > { %v1502_v52 = vpop.f32.mrf.mxu2  ;;  %v1407_v26 = vpop.f32.mrf.mxu0 }
 0x11b   : > { %v1551_v37 = vpop.f32.mrf.mxu3  ;;  %v1503_v10 = vadd.f32 %v1502_v52, %v1454_v28  ;;  %v1456_v61 = vpop.f32.mrf.mxu1  ;;  %v1408_v32 = vadd.f32 %v1407_v26, %v4362_v53  ;;  %v3571_v52 = vld [vmem:[%s5188_s1 + $0x2e0] sm:$0xf0] }
 0x11d   : > { %v4634_v30 = vadd.f32 %v1551_v37, %v1503_v10  ;;  %v1457_v27 = vadd.f32 %v1456_v61, %v1408_v32  ;;  %3316 = vmatmul.msk.bf16.gmra.mxu0 %vm1325_vm2, %v4631_v42  ;;  %v3224_v10 = vor.u32 %v3571_v52, %v3223_v15 }
 0x11e   : > { %1651 = vmatmul.bf16.gmra.mxu1 %v4325_v29 }
 0x11f   : > { %1700 = vmatmul.bf16.gmra.mxu2 %v4327_v50  ;;  %2001 = vmatpush.bf16.msrb.mxu1 %v3224_v10 }
 0x120   : > { %1749 = vmatmul.bf16.gmra.mxu3 %v4329_v2 }
 0x122   : > { %v1505_v16 = vpop.f32.mrf.mxu2  ;;  %v1409_v48 = vpop.f32.mrf.mxu0 }
 0x123   : > { %v1554_v32 = vpop.f32.mrf.mxu3  ;;  %v1506_v58 = vadd.f32 %v1505_v16, %v1457_v27  ;;  %v1458_v28 = vpop.f32.mrf.mxu1  ;;  %v1410_v46 = vadd.f32 %v1409_v48, %v4362_v53  ;;  %v3295_v27 = vld [vmem:[%s5188_s1 + $0x368] sm:$0xf]  ;;  %v3589_v53 = vld [vmem:[%s5188_s1 + $0x370] sm:$0xf0]  ;;  %v4663_v16 = vperm.slane %v4353_v34, 1 }
 0x124   : > { %v3296_v26 = vor.u32 %v3589_v53, %v3295_v27  ;;  %v3115_v34 = vld [vmem:[%s5188_s1 + $0x200] sm:$0xf] }
 0x125   : > { %v4648_v11 = vadd.f32 %v1554_v32, %v1506_v58  ;;  %v1459_v37 = vadd.f32 %v1458_v28, %v1410_v46 }
 0x126   : > { %2052 = vmatpush.bf16.msrb.mxu2 %v3296_v26  ;;  %v3568_v26 = vld [vmem:[%s5188_s1 + $0x2c8] sm:$0xf0] }
 0x12a   : > { %v1507_v61 = vpop.f32.mrf.mxu2  ;;  %v1568_v51 = vpop.f32.mrf.mxu0 }
 0x12b   : > { %v1556_v36 = vpop.f32.mrf.mxu3  ;;  %v1508_v3 = vadd.f32 %v1507_v61, %v1459_v37  ;;  %v1617_v32 = vpop.f32.mrf.mxu1  ;;  %v1569_v58 = vadd.f32 %v1568_v51, %v4385_v14  ;;  %v3544_v14 = vld [vmem:[%s5188_s1 + $0x208] sm:$0xf0] }
 0x12c   : > { %v1618_v28 = vadd.f32 %v1617_v32, %v4663_v16  ;;  %v3116_v46 = vor.u32 %v3544_v14, %v3115_v34 }
 0x12d   : > { %v4666_v48 = vadd.f32 %v1556_v36, %v1508_v3  ;;  %1763 = vmatmul.bf16.vlgmr.msra.gmra.mxu0 %v4018_v12  ;;  %v2098_v61 = vmax.f32 %v1569_v58, 0.0  ;;  %v3283_v58 = vld [vmem:[%s5188_s1 + $0x350] sm:$0xf] }
 0x12e   : > { %3317 = vmatmul.msk.bf16.vlgmr.msra.gmra.mxu1 %vm1325_vm2, %v4364_v54  ;;  %1953 = vmatpush.bf16.msrb.mxu0 %v3116_v46 }
 0x12f   : > { %1861 = vmatmul.bf16.vlgmr.msra.gmra.mxu2 %v4012_v8 }
 0x130   : > { %1910 = vmatmul.bf16.vlgmr.msra.gmra.mxu3 %v4014_v9  ;;  %v3211_v9 = vld [vmem:[%s5188_s1 + $0x2c0] sm:$0xf] }
 0x131   : > { %v3212_v3 = vor.u32 %v3568_v26, %v3211_v9 }
 0x132   : > { %v1666_v15 = vpop.f32.mrf.mxu2  ;;  %v1570_v10 = vpop.f32.mrf.mxu0 }
 0x133   : > { %v1715_v52 = vpop.f32.mrf.mxu3  ;;  %v1667_v37 = vadd.f32 %v1666_v15, %v1618_v28  ;;  %v1619_v27 = vpop.f32.mrf.mxu1  ;;  %v1571_v53 = vadd.f32 %v1570_v10, %v4390_v56  ;;  %2002 = vmatpush.bf16.msrb.mxu1 %v3212_v3 }
 0x134   : > { %v1620_v32 = vadd.f32 %v1619_v27, %v4663_v16 }
 0x135   : > { %v4681_v8 = vadd.f32 %v1715_v52, %v1667_v37  ;;  %v2101_v36 = vmax.f32 %v1571_v53, 0.0  ;;  %v3586_v37 = vld [vmem:[%s5188_s1 + $0x358] sm:$0xf0]  ;;  %v3541_v53 = vld [vmem:[%s5188_s1 + $0x1f0] sm:$0xf0] }
 0x136   : > { %v3284_v10 = vor.u32 %v3586_v37, %v3283_v58 }
 0x137   : > { %v4689_v51 = vpack.c.bf16 %v2101_v36, %v2098_v61 }
 0x138   : > { %2053 = vmatpush.bf16.msrb.mxu2 %v3284_v10 }
 0x13a   : > { %v1668_v28 = vpop.f32.mrf.mxu2  ;;  %v1573_v14 = vpop.f32.mrf.mxu0 }
 0x13b   : > { %v1717_v56 = vpop.f32.mrf.mxu3  ;;  %v1669_v34 = vadd.f32 %v1668_v28, %v1620_v32  ;;  %v1622_v46 = vpop.f32.mrf.mxu1  ;;  %v1574_v15 = vadd.f32 %v1573_v14, %v4417_v35  ;;  %v3103_v35 = vld [vmem:[%s5188_s1 + $0x1e8] sm:$0xf] }
 0x13c   : > { %v1623_v27 = vadd.f32 %v1622_v46, %v4663_v16  ;;  %v3104_v9 = vor.u32 %v3541_v53, %v3103_v35 }
 0x13d   : > { %v4693_v52 = vadd.f32 %v1717_v56, %v1669_v34  ;;  %1768 = vmatmul.bf16.gmra.mxu0 %v4054_v43  ;;  %v3565_v56 = vld [vmem:[%s5188_s1 + $0x2b0] sm:$0xf0]  ;;  %v2104_v34 = vmax.f32 %v1574_v15, 0.0 }
 0x13e   : > { %3318 = vmatmul.msk.bf16.gmra.mxu1 %vm1325_vm2, %v4387_v38  ;;  %1954 = vmatpush.bf16.msrb.mxu0 %v3104_v9 }
 0x13f   : > { %1866 = vmatmul.bf16.gmra.mxu2 %v4048_v40 }
 0x140   : > { %1915 = vmatmul.bf16.gmra.mxu3 %v4050_v41  ;;  %v3199_v41 = vld [vmem:[%s5188_s1 + $0x2a8] sm:$0xf] }
 0x141   : > { %v3200_v46 = vor.u32 %v3565_v56, %v3199_v41 }
 0x142   : > { %v1671_v26 = vpop.f32.mrf.mxu2  ;;  %v1575_v3 = vpop.f32.mrf.mxu0 }
 0x143   : > { %v1720_v61 = vpop.f32.mrf.mxu3  ;;  %v1672_v36 = vadd.f32 %v1671_v26, %v1623_v27  ;;  %v1624_v32 = vpop.f32.mrf.mxu1  ;;  %v1576_v40 = vadd.f32 %v1575_v3, %v4422_v57  ;;  %2003 = vmatpush.bf16.msrb.mxu1 %v3200_v46 }
 0x144   : > { %v1625_v37 = vadd.f32 %v1624_v32, %v4663_v16  ;;  %v3538_v32 = vld [vmem:[%s5188_s1 + $0x1d8] sm:$0xf0] }
 0x145   : > { %v4714_v28 = vadd.f32 %v1720_v61, %v1672_v36  ;;  %v2107_v14 = vmax.f32 %v1576_v40, 0.0  ;;  %v3271_v61 = vld [vmem:[%s5188_s1 + $0x338] sm:$0xf]  ;;  %v3091_v36 = vld [vmem:[%s5188_s1 + $0x1d0] sm:$0xf] }
 0x147   : > { %v4722_v58 = vpack.c.bf16 %v2107_v14, %v2104_v34 }
 0x14a   : > { %v1673_v10 = vpop.f32.mrf.mxu2  ;;  %v1578_v35 = vpop.f32.mrf.mxu0 }
 0x14b   : > { %v1722_v57 = vpop.f32.mrf.mxu3  ;;  %v1674_v27 = vadd.f32 %v1673_v10, %v1625_v37  ;;  %v1627_v53 = vpop.f32.mrf.mxu1  ;;  %v1579_v9 = vadd.f32 %v1578_v35, %v4442_v31  ;;  %v3583_v31 = vld [vmem:[%s5188_s1 + $0x340] sm:$0xf0]  ;;  %v3187_v37 = vld [vmem:[%s5188_s1 + $0x290] sm:$0xf]  ;;  %v3562_v10 = vld [vmem:[%s5188_s1 + $0x298] sm:$0xf0] }
 0x14c   : > { %v1628_v15 = vadd.f32 %v1627_v53, %v4663_v16  ;;  %v3272_v3 = vor.u32 %v3583_v31, %v3271_v61  ;;  %v3188_v35 = vor.u32 %v3562_v10, %v3187_v37 }
 0x14d   : > { %v4726_v26 = vadd.f32 %v1722_v57, %v1674_v27  ;;  %1773 = vmatmul.bf16.gmra.mxu0 %v4082_v13  ;;  %v2110_v57 = vmax.f32 %v1579_v9, 0.0 }
 0x14e   : > { %3319 = vmatmul.msk.bf16.gmra.mxu1 %vm1325_vm2, %v4419_v59  ;;  %2054 = vmatpush.bf16.msrb.mxu2 %v3272_v3 }
 0x14f   : > { %1871 = vmatmul.bf16.gmra.mxu2 %v4076_v6  ;;  %v3092_v6 = vor.u32 %v3538_v32, %v3091_v36  ;;  %2004 = vmatpush.bf16.msrb.mxu1 %v3188_v35 }
 0x150   : > { %1920 = vmatmul.bf16.gmra.mxu3 %v4078_v7 }
 0x151   : > { %1955 = vmatpush.bf16.msrb.mxu0 %v3092_v6 }
 0x152   : > { %v1676_v40 = vpop.f32.mrf.mxu2  ;;  %v1580_v56 = vpop.f32.mrf.mxu0 }
 0x153   : > { %v1725_v7 = vpop.f32.mrf.mxu3  ;;  %v1677_v41 = vadd.f32 %v1676_v40, %v1628_v15  ;;  %v1629_v34 = vpop.f32.mrf.mxu1  ;;  %v1581_v14 = vadd.f32 %v1580_v56, %v4453_v4  ;;  %v3079_v40 = vld [vmem:[%s5188_s1 + $0x1b8] sm:$0xf] }
 0x154   : > { %v1630_v15 = vadd.f32 %v1629_v34, %v4663_v16 }
 0x155   : > { %v4747_v46 = vadd.f32 %v1725_v7, %v1677_v41  ;;  %v2113_v27 = vmax.f32 %v1581_v14, 0.0 }
 0x157   : > { %v4755_v53 = vpack.c.bf16 %v2113_v27, %v2110_v57  ;;  %v3559_v57 = vld [vmem:[%s5188_s1 + $0x280] sm:$0xf0] }
 0x15a   : > { %v1678_v61 = vpop.f32.mrf.mxu2  ;;  %v1583_v36 = vpop.f32.mrf.mxu0 }
 0x15b   : > { %v1727_v4 = vpop.f32.mrf.mxu3  ;;  %v1679_v31 = vadd.f32 %v1678_v61, %v1630_v15  ;;  %v1632_v3 = vpop.f32.mrf.mxu1  ;;  %v1584_v32 = vadd.f32 %v1583_v36, %v4478_v1  ;;  %v3535_v1 = vld [vmem:[%s5188_s1 + $0x1c0] sm:$0xf0]  ;;  %v3259_v61 = vld [vmem:[%s5188_s1 + $0x320] sm:$0xf] }
 0x15c   : > { %v1633_v9 = vadd.f32 %v1632_v3, %v4663_v16  ;;  %v3080_v7 = vor.u32 %v3535_v1, %v3079_v40 }
 0x15d   : > { %v4759_v6 = vadd.f32 %v1727_v4, %v1679_v31  ;;  %1778 = vmatmul.bf16.gmra.mxu0 %v4112_v47  ;;  %v2116_v27 = vmax.f32 %v1584_v32, 0.0 }
 0x15e   : > { %3320 = vmatmul.msk.bf16.gmra.mxu1 %vm1325_vm2, %v4450_v63  ;;  %1956 = vmatpush.bf16.msrb.mxu0 %v3080_v7 }
 0x15f   : > { %1876 = vmatmul.bf16.gmra.mxu2 %v4106_v44 }
 0x160   : > { %1925 = vmatmul.bf16.gmra.mxu3 %v4108_v45  ;;  %v3175_v45 = vld [vmem:[%s5188_s1 + $0x278] sm:$0xf] }
 0x161   : > { %v3176_v15 = vor.u32 %v3559_v57, %v3175_v45  ;;  %v3599_v57 = vld [vmem:[%s5190_s3 + $0x30] sm:$0xff] }
 0x162   : > { %v1681_v41 = vpop.f32.mrf.mxu2  ;;  %v1585_v14 = vpop.f32.mrf.mxu0 }
 0x163   : > { %v1730_v56 = vpop.f32.mrf.mxu3  ;;  %v1682_v34 = vadd.f32 %v1681_v41, %v1633_v9  ;;  %v1634_v37 = vpop.f32.mrf.mxu1  ;;  %v1586_v10 = vadd.f32 %v1585_v14, %v4489_v62  ;;  %v3580_v62 = vld [vmem:[%s5188_s1 + $0x328] sm:$0xf0]  ;;  %2005 = vmatpush.bf16.msrb.mxu1 %v3176_v15 }
 0x164   : > { %v3260_v4 = vor.u32 %v3580_v62, %v3259_v61  ;;  %v1635_v36 = vadd.f32 %v1634_v37, %v4663_v16  ;;  %v3532_v14 = vld [vmem:[%s5188_s1 + $0x1a8] sm:$0xf0]  ;;  %v3163_v61 = vld [vmem:[%s5188_s1 + $0x260] sm:$0xf] }
 0x165   : > { %v4774_v44 = vadd.f32 %v1730_v56, %v1682_v34  ;;  %v2119_v35 = vmax.f32 %v1586_v10, 0.0  ;;  %v3600_v56 = vld [vmem:[%s5190_s3 + $0x38] sm:$0xff]  ;;  %v3556_v62 = vld [vmem:[%s5188_s1 + $0x268] sm:$0xf0] }
 0x166   : > { %2055 = vmatpush.bf16.msrb.mxu2 %v3260_v4  ;;  %2343 = vmatpush.bf16.msrb.mxu3 %v3600_v56  ;;  %v3597_v56 = vld [vmem:[%s5190_s3 + $0x20] sm:$0xff] }
 0x167   : > { %v4788_v31 = vpack.c.bf16 %v2119_v35, %v2116_v27 }
 0x16a   : > { %v1683_v3 = vpop.f32.mrf.mxu2  ;;  %v1588_v40 = vpop.f32.mrf.mxu0  ;;  %2344 = vmatpush.bf16.msrb.mxu3 %v3599_v57 }
 0x16b   : > { %v1732_v9 = vpop.f32.mrf.mxu3  ;;  %v1684_v32 = vadd.f32 %v1683_v3, %v1635_v36  ;;  %v1637_v1 = vpop.f32.mrf.mxu1  ;;  %v1589_v7 = vadd.f32 %v1588_v40, %v4523_v39  ;;  %v3067_v39 = vld [vmem:[%s5188_s1 + $0x1a0] sm:$0xf]  ;;  %v3164_v3 = vor.u32 %v3556_v62, %v3163_v61 }
 0x16c   : > { %v1638_v34 = vadd.f32 %v1637_v1, %v4663_v16  ;;  %v3068_v37 = vor.u32 %v3532_v14, %v3067_v39 }
 0x16d   : > { %v4792_v41 = vadd.f32 %v1732_v9, %v1684_v32  ;;  %1783 = vmatmul.bf16.gmra.mxu0 %v4162_v24  ;;  %v2122_v4 = vmax.f32 %v1589_v7, 0.0  ;;  %v3598_v9 = vld [vmem:[%s5190_s3 + $0x28] sm:$0xff]  ;;  %2006 = vmatpush.bf16.msrb.mxu1 %v3164_v3 }
 0x16e   : > { %3321 = vmatmul.msk.bf16.gmra.mxu1 %vm1325_vm2, %v4486_v55  ;;  %1957 = vmatpush.bf16.msrb.mxu0 %v3068_v37 }
 0x16f   : > { %1881 = vmatmul.bf16.gmra.mxu2 %v4156_v21  ;;  %2345 = vmatpush.bf16.msrb.mxu3 %v3598_v9 }
 0x170   : > { %1930 = vmatmul.bf16.gmra.mxu3 %v4158_v22 }
 0x172   : > { %v1686_v10 = vpop.f32.mrf.mxu2  ;;  %v1590_v27 = vpop.f32.mrf.mxu0 }
 0x173   : > { %v1735_v45 = vpop.f32.mrf.mxu3  ;;  %v1687_v21 = vadd.f32 %v1686_v10, %v1638_v34  ;;  %v1639_v22 = vpop.f32.mrf.mxu1  ;;  %v1591_v35 = vadd.f32 %v1590_v27, %v4546_v0  ;;  %2346 = vmatpush.bf16.msrb.mxu3 %v3597_v56  ;;  %v3247_v10 = vld [vmem:[%s5188_s1 + $0x308] sm:$0xf] }
 0x174   : > { %v1640_v32 = vadd.f32 %v1639_v22, %v4663_v16  ;;  %v3055_v27 = vld [vmem:[%s5188_s1 + $0x188] sm:$0xf]  ;;  %v3529_v22 = vld [vmem:[%s5188_s1 + $0x190] sm:$0xf0] }
 0x175   : > { %v4813_v15 = vadd.f32 %v1735_v45, %v1687_v21  ;;  %v2125_v36 = vmax.f32 %v1591_v35, 0.0  ;;  %v3577_v45 = vld [vmem:[%s5188_s1 + $0x310] sm:$0xf0]  ;;  %v3056_v35 = vor.u32 %v3529_v22, %v3055_v27 }
 0x176   : > { %v3248_v57 = vor.u32 %v3577_v45, %v3247_v10 }
 0x177   : > { %v4824_v0 = vpack.c.bf16 %v2125_v36, %v2122_v4  ;;  %1958 = vmatpush.bf16.msrb.mxu0 %v3056_v35 }
 0x178   : > { %2056 = vmatpush.bf16.msrb.mxu2 %v3248_v57  ;;  %v3593_v57 = vld [vmem:[%s5190_s3] sm:$0xff] }
 0x17a   : > { %v1688_v40 = vpop.f32.mrf.mxu2  ;;  %v1593_v7 = vpop.f32.mrf.mxu0 }
 0x17b   : > { %v1737_v1 = vpop.f32.mrf.mxu3  ;;  %v1689_v34 = vadd.f32 %v1688_v40, %v1640_v32  ;;  %v1642_v39 = vpop.f32.mrf.mxu1  ;;  %v1594_v14 = vadd.f32 %v1593_v7, %v4590_v49  ;;  %v3596_v49 = vld [vmem:[%s5190_s3 + $0x18] sm:$0xff]  ;;  %v3151_v32 = vld [vmem:[%s5188_s1 + $0x248] sm:$0xf]  ;;  %v3553_v40 = vld [vmem:[%s5188_s1 + $0x250] sm:$0xf0] }
 0x17c   : > { %v1643_v21 = vadd.f32 %v1642_v39, %v4663_v16  ;;  %2347 = vmatpush.bf16.msrb.mxu3 %v3596_v49  ;;  %v3594_v7 = vld [vmem:[%s5190_s3 + $0x8] sm:$0xff] }
 0x17d   : > { %v4831_v37 = vadd.f32 %v1737_v1, %v1689_v34  ;;  %1788 = vmatmul.bf16.gmra.mxu0 %v4230_v20  ;;  %v2128_v1 = vmax.f32 %v1594_v14, 0.0  ;;  %v3152_v34 = vor.u32 %v3553_v40, %v3151_v32 }
 0x17e   : > { %3322 = vmatmul.msk.bf16.gmra.mxu1 %vm1325_vm2, %v4543_v23 }
 0x17f   : > { %1886 = vmatmul.bf16.gmra.mxu2 %v4224_v17  ;;  %v3595_v17 = vld [vmem:[%s5190_s3 + $0x10] sm:$0xff]  ;;  %2007 = vmatpush.bf16.msrb.mxu1 %v3152_v34 }
 0x180   : > { %1935 = vmatmul.bf16.gmra.mxu3 %v4226_v18 }
 0x181   : > { %2348 = vmatpush.bf16.msrb.mxu3 %v3595_v17 }
 0x182   : > { %v1691_v61 = vpop.f32.mrf.mxu2  ;;  %v1595_v18 = vpop.f32.mrf.mxu0 }
 0x183   : > { %v1740_v62 = vpop.f32.mrf.mxu3  ;;  %v1692_v4 = vadd.f32 %v1691_v61, %v1643_v21  ;;  %v1644_v36 = vpop.f32.mrf.mxu1  ;;  %v1596_v3 = vadd.f32 %v1595_v18, %v4607_v19  ;;  %v5216_v61 = vld [vmem:[#allocation8_spill] sm:$0xff] }
 0x184   : > { %v1645_v39 = vadd.f32 %v1644_v36, %v4663_v16 }
 0x185   : > { %v4858_v9 = vadd.f32 %v1740_v62, %v1692_v4  ;;  %v2131_v56 = vmax.f32 %v1596_v3, 0.0  ;;  %2349 = vmatpush.bf16.msrb.mxu3 %v3594_v7 }
 0x187   : > { %v4869_v19 = vpack.c.bf16 %v2131_v56, %v2128_v1 }
 0x189   : > { %2350 = vmatpush.bf16.msrb.mxu3 %v3593_v57 }
 0x18a   : > { %v1693_v10 = vpop.f32.mrf.mxu2  ;;  %v1598_v14 = vpop.f32.mrf.mxu0 }
 0x18b   : > { %v1742_v45 = vpop.f32.mrf.mxu3  ;;  %v1694_v49 = vadd.f32 %v1693_v10, %v1645_v39  ;;  %v1647_v21 = vpop.f32.mrf.mxu1  ;;  %v1599_v27 = vadd.f32 %v1598_v14, %v4623_v60  ;;  %v3608_v14 = vld [vmem:[%s5190_s3 + $0x78] sm:$0xff] }
 0x18c   : > { %v1648_v35 = vadd.f32 %v1647_v21, %v4663_v16  ;;  %2392 = vmatpush.bf16.msra.mxu0 %v3608_v14 }
 0x18d   : > { %v4876_v22 = vadd.f32 %v1742_v45, %v1694_v49  ;;  %1793 = vmatmul.bf16.gmra.mxu0 %v4299_v33  ;;  %v2134_v32 = vmax.f32 %v1599_v27, 0.0  ;;  %v5217_v49 = vld [vmem:[#allocation10_spill] sm:$0xff] }
 0x18e   : > { %3323 = vmatmul.msk.bf16.gmra.mxu1 %vm1325_vm2, %v4604_v5 }
 0x18f   : > { %1891 = vmatmul.bf16.gmra.mxu2 %v4293_v25 }
 0x190   : > { %1940 = vmatmul.bf16.gmra.mxu3 %v5216_v61 }
 0x192   : > { %v1696_v62 = vpop.f32.mrf.mxu2  ;;  %v1600_v18 = vpop.f32.mrf.mxu0 }
 0x193   : > { %v1745_v17 = vpop.f32.mrf.mxu3  ;;  %v1697_v4 = vadd.f32 %v1696_v62, %v1648_v35  ;;  %v1649_v36 = vpop.f32.mrf.mxu1  ;;  %v1601_v60 = vadd.f32 %v1600_v18, %v4634_v30 }
 0x194   : > { %v1650_v56 = vadd.f32 %v1649_v36, %v4663_v16 }
 0x195   : > { %v4885_v3 = vadd.f32 %v1745_v17, %v1697_v4  ;;  %v2137_v40 = vmax.f32 %v1601_v60, 0.0 }
 0x197   : > { %v4887_v1 = vpack.c.bf16 %v2137_v40, %v2134_v32 }
 0x19a   : > { %v1698_v34 = vpop.f32.mrf.mxu2  ;;  %v1603_v39 = vpop.f32.mrf.mxu0 }
 0x19b   : > { %v1747_v7 = vpop.f32.mrf.mxu3  ;;  %v1699_v25 = vadd.f32 %v1698_v34, %v1650_v56  ;;  %v1652_v10 = vpop.f32.mrf.mxu1  ;;  %v1604_v45 = vadd.f32 %v1603_v39, %v4648_v11  ;;  %v3610_v11 = vld [vmem:[%s5190_s3 + $0x88] sm:$0xff] }
 0x19c   : > { %v1653_v30 = vadd.f32 %v1652_v10, %v4663_v16  ;;  %2447 = vmatpush.bf16.msra.mxu1 %v3610_v11  ;;  %v5218_v10 = vld [vmem:[#allocation2_spill] sm:$0xff] }
 0x19d   : > { %v4891_v57 = vadd.f32 %v1747_v7, %v1699_v25  ;;  %1798 = vmatmul.bf16.gmra.mxu0 %v5217_v49 }
 0x19e   : > { %3324 = vmatmul.msk.bf16.gmra.mxu1 %vm1325_vm2, %v4631_v42 }
 0x19f   : > { %1896 = vmatmul.bf16.gmra.mxu2 %v4325_v29 }
 0x1a0   : > { %1945 = vmatmul.bf16.gmra.mxu3 %v4327_v50  ;;  %v2140_v50 = vmax.f32 %v1604_v45, 0.0 }
 0x1a2   : > { %v1701_v21 = vpop.f32.mrf.mxu2  ;;  %v1605_v61 = vpop.f32.mrf.mxu0 }
 0x1a3   : > { %v1750_v27 = vpop.f32.mrf.mxu3  ;;  %v1702_v35 = vadd.f32 %v1701_v21, %v1653_v30  ;;  %v1654_v62 = vpop.f32.mrf.mxu1  ;;  %v1606_v17 = vadd.f32 %v1605_v61, %v4666_v48 }
 0x1a4   : > { %v1655_v36 = vadd.f32 %v1654_v62, %v4663_v16  ;;  %v3687_v16 = vld [vmem:[%s5189_s2] sm:$0x7] }
 0x1a5   : > { %v4906_v29 = vadd.f32 %v1750_v27, %v1702_v35  ;;  %v2143_v4 = vmax.f32 %v1606_v17, 0.0  ;;  %v4922_v48 = vperm.slane %v3687_v16, 2 }
 0x1a7   : > { %v4908_v18 = vpack.c.bf16 %v2143_v4, %v2140_v50 }
 0x1aa   : > { %v1703_v60 = vpop.f32.mrf.mxu2  ;;  %v1764_v56 = vpop.f32.mrf.mxu0 }
 0x1ab   : > { %v1752_v32 = vpop.f32.mrf.mxu3  ;;  %v1704_v40 = vadd.f32 %v1703_v60, %v1655_v36  ;;  %v1813_v34 = vpop.f32.mrf.mxu1  ;;  %v1765_v7 = vadd.f32 %v1764_v56, %v4681_v8  ;;  %v3607_v8 = vld [vmem:[%s5190_s3 + $0x70] sm:$0xff]  ;;  %v5219_v56 = vld [vmem:[#allocation3_spill] sm:$0xff] }
 0x1ac   : > { %2393 = vmatpush.bf16.msra.mxu0 %v3607_v8 }
 0x1ad   : > { %v4912_v25 = vadd.f32 %v1752_v32, %v1704_v40  ;;  %v1814_v39 = vadd.f32 %v1813_v34, %v1765_v7  ;;  %1959 = vmatmul.bf16.vlgmr.msrb.gmra.mxu0 %v5218_v10 }
 0x1ae   : > { %2008 = vmatmul.bf16.vlgmr.msrb.gmra.mxu1 %v4018_v12 }
 0x1af   : > { %3325 = vmatmul.msk.bf16.vlgmr.msrb.gmra.mxu2 %vm1325_vm2, %v4364_v54  ;;  %v2099_v27 = vmax.f32 %v1814_v39, 0.0 }
 0x1b0   : > { %2351 = vmatmul.bf16.vlgmr.msrb.gmra.mxu3 %v4689_v51 }
 0x1b2   : > { %v1862_v45 = vpop.f32.mrf.mxu2  ;;  %v1766_v14 = vpop.f32.mrf.mxu0 }
 0x1b3   : > { %v1911_v30 = vpop.f32.mrf.mxu3  ;;  %v1863_v12 = vadd.f32 %v1862_v45, %v4922_v48  ;;  %v1815_v11 = vpop.f32.mrf.mxu1  ;;  %v1767_v54 = vadd.f32 %v1766_v14, %v4693_v52  ;;  %v3606_v52 = vld [vmem:[%s5190_s3 + $0x68] sm:$0xff] }
 0x1b4   : > { %2394 = vmatpush.bf16.msra.mxu0 %v3606_v52 }
 0x1b5   : > { %v4929_v51 = vadd.f32 %v1911_v30, %v1863_v12  ;;  %v1816_v21 = vadd.f32 %v1815_v11, %v1767_v54 }
 0x1b7   : > { %v2102_v35 = vmax.f32 %v1816_v21, 0.0 }
 0x1b9   : > { %v4931_v61 = vpack.c.bf16 %v2102_v35, %v2099_v27 }
 0x1ba   : > { %v1864_v62 = vpop.f32.mrf.mxu2  ;;  %v1769_v4 = vpop.f32.mrf.mxu0 }
 0x1bb   : > { %v1913_v17 = vpop.f32.mrf.mxu3  ;;  %v1865_v50 = vadd.f32 %v1864_v62, %v4922_v48  ;;  %v1818_v36 = vpop.f32.mrf.mxu1  ;;  %v1770_v60 = vadd.f32 %v1769_v4, %v4714_v28  ;;  %v5220_v62 = vld [vmem:[#allocation4_spill] sm:$0xff] }
 0x1bd   : > { %v4935_v32 = vadd.f32 %v1913_v17, %v1865_v50  ;;  %v1819_v40 = vadd.f32 %v1818_v36, %v1770_v60  ;;  %1964 = vmatmul.bf16.gmra.mxu0 %v5219_v56 }
 0x1be   : > { %2013 = vmatmul.bf16.gmra.mxu1 %v4054_v43 }
 0x1bf   : > { %3326 = vmatmul.msk.bf16.gmra.mxu2 %vm1325_vm2, %v4387_v38  ;;  %v2105_v45 = vmax.f32 %v1819_v40, 0.0 }
 0x1c0   : > { %2356 = vmatmul.bf16.gmra.mxu3 %v4722_v58 }
 0x1c2   : > { %v1867_v34 = vpop.f32.mrf.mxu2  ;;  %v1771_v39 = vpop.f32.mrf.mxu0 }
 0x1c3   : > { %v1916_v7 = vpop.f32.mrf.mxu3  ;;  %v1868_v28 = vadd.f32 %v1867_v34, %v4922_v48  ;;  %v1820_v10 = vpop.f32.mrf.mxu1  ;;  %v1772_v16 = vadd.f32 %v1771_v39, %v4726_v26  ;;  %v3605_v26 = vld [vmem:[%s5190_s3 + $0x60] sm:$0xff] }
 0x1c4   : > { %2395 = vmatpush.bf16.msra.mxu0 %v3605_v26 }
 0x1c5   : > { %v4947_v8 = vadd.f32 %v1916_v7, %v1868_v28  ;;  %v1821_v43 = vadd.f32 %v1820_v10, %v1772_v16 }
 0x1c7   : > { %v2108_v38 = vmax.f32 %v1821_v43, 0.0 }
 0x1c9   : > { %v4949_v12 = vpack.c.bf16 %v2108_v38, %v2105_v45  ;;  %v5221_v45 = vld [vmem:[#allocation5_spill] sm:$0xff] }
 0x1ca   : > { %v1869_v30 = vpop.f32.mrf.mxu2  ;;  %v1774_v11 = vpop.f32.mrf.mxu0 }
 0x1cb   : > { %v1918_v58 = vpop.f32.mrf.mxu3  ;;  %v1870_v14 = vadd.f32 %v1869_v30, %v4922_v48  ;;  %v1823_v54 = vpop.f32.mrf.mxu1  ;;  %v1775_v21 = vadd.f32 %v1774_v11, %v4747_v46 }
 0x1cd   : > { %v4953_v27 = vadd.f32 %v1918_v58, %v1870_v14  ;;  %v1824_v35 = vadd.f32 %v1823_v54, %v1775_v21  ;;  %1969 = vmatmul.bf16.gmra.mxu0 %v5220_v62 }
 0x1ce   : > { %2018 = vmatmul.bf16.gmra.mxu1 %v4082_v13 }
 0x1cf   : > { %3327 = vmatmul.msk.bf16.gmra.mxu2 %vm1325_vm2, %v4419_v59  ;;  %v2111_v56 = vmax.f32 %v1824_v35, 0.0 }
 0x1d0   : > { %2361 = vmatmul.bf16.gmra.mxu3 %v4755_v53 }
 0x1d2   : > { %v1872_v17 = vpop.f32.mrf.mxu2  ;;  %v1776_v4 = vpop.f32.mrf.mxu0 }
 0x1d3   : > { %v1921_v50 = vpop.f32.mrf.mxu3  ;;  %v1873_v46 = vadd.f32 %v1872_v17, %v4922_v48  ;;  %v1825_v36 = vpop.f32.mrf.mxu1  ;;  %v1777_v60 = vadd.f32 %v1776_v4, %v4759_v6  ;;  %v3604_v6 = vld [vmem:[%s5190_s3 + $0x58] sm:$0xff] }
 0x1d4   : > { %2396 = vmatpush.bf16.msra.mxu0 %v3604_v6 }
 0x1d5   : > { %v4965_v40 = vadd.f32 %v1921_v50, %v1873_v46  ;;  %v1826_v13 = vadd.f32 %v1825_v36, %v1777_v60 }
 0x1d7   : > { %v2114_v59 = vmax.f32 %v1826_v13, 0.0  ;;  %v5222_v13 = vld [vmem:[#allocation6_spill] sm:$0xff] }
 0x1d9   : > { %v4967_v34 = vpack.c.bf16 %v2114_v59, %v2111_v56 }
 0x1da   : > { %v1874_v52 = vpop.f32.mrf.mxu2  ;;  %v1779_v28 = vpop.f32.mrf.mxu0 }
 0x1db   : > { %v1923_v53 = vpop.f32.mrf.mxu3  ;;  %v1875_v7 = vadd.f32 %v1874_v52, %v4922_v48  ;;  %v1828_v39 = vpop.f32.mrf.mxu1  ;;  %v1780_v10 = vadd.f32 %v1779_v28, %v4774_v44  ;;  %v3609_v44 = vld [vmem:[%s5190_s3 + $0x80] sm:$0xff] }
 0x1dc   : > { %2448 = vmatpush.bf16.msra.mxu1 %v3609_v44 }
 0x1dd   : > { %v4971_v16 = vadd.f32 %v1923_v53, %v1875_v7  ;;  %v1829_v43 = vadd.f32 %v1828_v39, %v1780_v10  ;;  %1974 = vmatmul.bf16.gmra.mxu0 %v5221_v45  ;;  %v5223_v45 = vld [vmem:[#allocation7_spill] sm:$0xff] }
 0x1de   : > { %2023 = vmatmul.bf16.gmra.mxu1 %v4112_v47 }
 0x1df   : > { %3328 = vmatmul.msk.bf16.gmra.mxu2 %vm1325_vm2, %v4450_v63  ;;  %v2117_v54 = vmax.f32 %v1829_v43, 0.0 }
 0x1e0   : > { %2366 = vmatmul.bf16.gmra.mxu3 %v4788_v31 }
 0x1e2   : > { %v1877_v38 = vpop.f32.mrf.mxu2  ;;  %v1781_v47 = vpop.f32.mrf.mxu0 }
 0x1e3   : > { %v1926_v30 = vpop.f32.mrf.mxu3  ;;  %v1878_v58 = vadd.f32 %v1877_v38, %v4922_v48  ;;  %v1830_v14 = vpop.f32.mrf.mxu1  ;;  %v1782_v63 = vadd.f32 %v1781_v47, %v4792_v41  ;;  %v3603_v41 = vld [vmem:[%s5190_s3 + $0x50] sm:$0xff] }
 0x1e4   : > { %2397 = vmatpush.bf16.msra.mxu0 %v3603_v41 }
 0x1e5   : > { %v4986_v11 = vadd.f32 %v1926_v30, %v1878_v58  ;;  %v1831_v31 = vadd.f32 %v1830_v14, %v1782_v63 }
 0x1e7   : > { %v2120_v21 = vmax.f32 %v1831_v31, 0.0 }
 0x1e9   : > { %v4988_v62 = vpack.c.bf16 %v2120_v21, %v2117_v54  ;;  %v5224_v21 = vld [vmem:[#allocation9_spill] sm:$0xff] }
 0x1ea   : > { %v1879_v35 = vpop.f32.mrf.mxu2  ;;  %v1784_v17 = vpop.f32.mrf.mxu0 }
 0x1eb   : > { %v1880_v26 = vadd.f32 %v1879_v35, %v4922_v48  ;;  %v1833_v50 = vpop.f32.mrf.mxu1  ;;  %v1928_v46 = vpop.f32.mrf.mxu3  ;;  %v1785_v4 = vadd.f32 %v1784_v17, %v4813_v15 }
 0x1ed   : > { %v4992_v36 = vadd.f32 %v1928_v46, %v1880_v26  ;;  %v1834_v60 = vadd.f32 %v1833_v50, %v1785_v4  ;;  %1979 = vmatmul.bf16.gmra.mxu0 %v5222_v13 }
 0x1ee   : > { %2028 = vmatmul.bf16.gmra.mxu1 %v4162_v24 }
 0x1ef   : > { %3329 = vmatmul.msk.bf16.gmra.mxu2 %vm1325_vm2, %v4486_v55  ;;  %v2123_v7 = vmax.f32 %v1834_v60, 0.0 }
 0x1f0   : > { %2371 = vmatmul.bf16.gmra.mxu3 %v4824_v0 }
 0x1f2   : > { %v5002_v56 = vpop.f32.mrf.mxu2  ;;  %v1786_v15 = vpop.f32.mrf.mxu0 }
 0x1f3   : > { %v1835_v59 = vpop.f32.mrf.mxu1  ;;  %v1787_v52 = vadd.f32 %v1786_v15, %v4831_v37  ;;  %v3602_v37 = vld [vmem:[%s5190_s3 + $0x48] sm:$0xff] }
 0x1f4   : > { %2398 = vmatpush.bf16.msra.mxu0 %v3602_v37 }
 0x1f5   : > { %v1836_v53 = vadd.f32 %v1835_v59, %v1787_v52 }
 0x1f7   : > { %v2126_v28 = vmax.f32 %v1836_v53, 0.0 }
 0x1f9   : > { %v5007_v39 = vpack.c.bf16 %v2126_v28, %v2123_v7 }
 0x1fa   : > { %v5005_v24 = vpop.f32.mrf.mxu2  ;;  %v1789_v55 = vpop.f32.mrf.mxu0 }
 0x1fb   : > { %v1838_v0 = vpop.f32.mrf.mxu1  ;;  %v1790_v10 = vadd.f32 %v1789_v55, %v4858_v9 }
 0x1fd   : > { %v1839_v43 = vadd.f32 %v1838_v0, %v1790_v10  ;;  %1984 = vmatmul.bf16.gmra.mxu0 %v5223_v45 }
 0x1fe   : > { %2033 = vmatmul.bf16.gmra.mxu1 %v4230_v20 }
 0x1ff   : > { %3330 = vmatmul.msk.bf16.gmra.mxu2 %vm1325_vm2, %v4543_v23  ;;  %v2129_v58 = vmax.f32 %v1839_v43, 0.0  ;;  %v3601_v23 = vld [vmem:[%s5190_s3 + $0x40] sm:$0xff] }
 0x200   : > { %2376 = vmatmul.bf16.gmra.mxu3 %v4869_v19  ;;  %2399 = vmatpush.bf16.msra.mxu0 %v3601_v23 }
 0x202   : > { %v5018_v6 = vpop.f32.mrf.mxu2  ;;  %v1791_v44 = vpop.f32.mrf.mxu0 }
 0x203   : > { %v1840_v38 = vpop.f32.mrf.mxu1  ;;  %v1792_v9 = vadd.f32 %v1791_v44, %v4876_v22 }
 0x205   : > { %v1841_v30 = vadd.f32 %v1840_v38, %v1792_v9 }
 0x207   : > { %v2132_v47 = vmax.f32 %v1841_v30, 0.0 }
 0x209   : > { %v5026_v19 = vpack.c.bf16 %v2132_v47, %v2129_v58 }
 0x20a   : > { %v5021_v20 = vpop.f32.mrf.mxu2  ;;  %v1794_v14 = vpop.f32.mrf.mxu0 }
 0x20b   : > { %v1843_v63 = vpop.f32.mrf.mxu1  ;;  %v1795_v31 = vadd.f32 %v1794_v14, %v4885_v3 }
 0x20d   : > { %v1844_v54 = vadd.f32 %v1843_v63, %v1795_v31  ;;  %1989 = vmatmul.bf16.gmra.mxu0 %v5224_v21 }
 0x20e   : > { %2038 = vmatmul.bf16.gmra.mxu1 %v4299_v33 }
 0x20f   : > { %3331 = vmatmul.msk.bf16.gmra.mxu2 %vm1325_vm2, %v4604_v5  ;;  %v2135_v46 = vmax.f32 %v1844_v54, 0.0 }
 0x210   : > { %2381 = vmatmul.bf16.gmra.mxu3 %v4887_v1 }
 0x212   : > { %v5034_v22 = vpop.f32.mrf.mxu2  ;;  %v1796_v35 = vpop.f32.mrf.mxu0 }
 0x213   : > { %v1845_v26 = vpop.f32.mrf.mxu1  ;;  %v1797_v17 = vadd.f32 %v1796_v35, %v4891_v57 }
 0x215   : > { %v1846_v50 = vadd.f32 %v1845_v26, %v1797_v17 }
 0x217   : > { %v2138_v3 = vmax.f32 %v1846_v50, 0.0 }
 0x219   : > { %v5039_v60 = vpack.c.bf16 %v2138_v3, %v2135_v46 }
 0x21a   : > { %v5037_v4 = vpop.f32.mrf.mxu2  ;;  %v1799_v13 = vpop.f32.mrf.mxu0 }
 0x21b   : > { %v1848_v33 = vpop.f32.mrf.mxu1  ;;  %v1800_v41 = vadd.f32 %v1799_v13, %v4906_v29 }
 0x21d   : > { %v1849_v5 = vadd.f32 %v1848_v33, %v1800_v41  ;;  %1994 = vmatmul.bf16.gmra.mxu0 %v4329_v2 }
 0x21e   : > { %2043 = vmatmul.bf16.gmra.mxu1 %v5217_v49 }
 0x21f   : > { %3332 = vmatmul.msk.bf16.gmra.mxu2 %vm1325_vm2, %v4631_v42  ;;  %v2141_v53 = vmax.f32 %v1849_v5, 0.0  ;;  %v3618_v42 = vld [vmem:[%s5192_s5 + $0x38] sm:$0xff] }
 0x220   : > { %2386 = vmatmul.bf16.gmra.mxu3 %v4908_v18  ;;  %2582 = vmatpush.bf16.msra.mxu2 %v3618_v42 }
 0x222   : > { %v5047_v1 = vpop.f32.mrf.mxu2  ;;  %v1801_v57 = vpop.f32.mrf.mxu0 }
 0x223   : > { %v1850_v15 = vpop.f32.mrf.mxu1  ;;  %v1802_v59 = vadd.f32 %v1801_v57, %v4912_v25 }
 0x225   : > { %v1851_v52 = vadd.f32 %v1850_v15, %v1802_v59 }
 0x227   : > { %v2144_v7 = vmax.f32 %v1851_v52, 0.0 }
 0x229   : > { %v5052_v28 = vpack.c.bf16 %v2144_v7, %v2141_v53 }
 0x22a   : > { %v5050_v29 = vpop.f32.mrf.mxu2  ;;  %v1960_v2 = vpop.f32.mrf.mxu0 }
 0x22b   : > { %v2009_v49 = vpop.f32.mrf.mxu1  ;;  %v1961_v55 = vadd.f32 %v1960_v2, %v4929_v51  ;;  %v3617_v51 = vld [vmem:[%s5192_s5 + $0x30] sm:$0xff] }
 0x22c   : > { %2583 = vmatpush.bf16.msra.mxu2 %v3617_v51  ;;  %v1883_v51 = vadd.f32 %v5002_v56, %v4922_v48 }
 0x22d   : > { %2400 = vmatmul.bf16.vlgmr.msra.gmra.mxu0 %v4931_v61  ;;  %v2010_v43 = vadd.f32 %v2009_v49, %v1961_v55 }
 0x232   : > { %v2058_v18 = vpop.f32.mrf.mxu2  ;;  %v1962_v25 = vpop.f32.mrf.mxu0 }
 0x233   : > { %v2011_v0 = vpop.f32.mrf.mxu1  ;;  %v1963_v10 = vadd.f32 %v1962_v25, %v4935_v32  ;;  %v2059_v45 = vadd.f32 %v2058_v18, %v2010_v43 }
 0x235   : > { %v2012_v37 = vadd.f32 %v2011_v0, %v1963_v10  ;;  %v2100_v61 = vmax.f32 %v2059_v45, 0.0 }
 0x23a   : > { %v2060_v44 = vpop.f32.mrf.mxu2  ;;  %v1965_v9 = vpop.f32.mrf.mxu0 }
 0x23b   : > { %v2061_v38 = vadd.f32 %v2060_v44, %v2012_v37  ;;  %v2014_v30 = vpop.f32.mrf.mxu1  ;;  %v1966_v23 = vadd.f32 %v1965_v9, %v4947_v8  ;;  %v3616_v8 = vld [vmem:[%s5192_s5 + $0x28] sm:$0xff] }
 0x23c   : > { %2584 = vmatpush.bf16.msra.mxu2 %v3616_v8 }
 0x23d   : > { %v2103_v58 = vmax.f32 %v2061_v38, 0.0  ;;  %2405 = vmatmul.bf16.gmra.mxu0 %v4949_v12  ;;  %v2015_v54 = vadd.f32 %v2014_v30, %v1966_v23  ;;  %v1931_v12 = vpop.f32.mrf.mxu3 }
 0x23f   : > { %v2148_v47 = vpack.c.bf16 %v2103_v58, %v2100_v61 }
 0x241   : > { %3405 = vmatmul.msk.bf16.vlgmr.msra.gmra.mxu1 %vm2318_vm3, %v2148_v47 }
 0x242   : > { %v2063_v32 = vpop.f32.mrf.mxu2  ;;  %v1967_v14 = vpop.f32.mrf.mxu0 }
 0x243   : > { %v2016_v63 = vpop.f32.mrf.mxu1  ;;  %v1968_v31 = vadd.f32 %v1967_v14, %v4953_v27  ;;  %v2064_v21 = vadd.f32 %v2063_v32, %v2015_v54 }
 0x245   : > { %v2017_v35 = vadd.f32 %v2016_v63, %v1968_v31  ;;  %v2106_v3 = vmax.f32 %v2064_v21, 0.0  ;;  %v1933_v15 = vpop.f32.mrf.mxu3  ;;  %v1932_v63 = vadd.f32 %v1931_v12, %v1883_v51  ;;  %v1888_v12 = vadd.f32 %v5018_v6, %v4922_v48 }
 0x24a   : > { %v2065_v26 = vpop.f32.mrf.mxu2  ;;  %v1970_v50 = vpop.f32.mrf.mxu0 }
 0x24b   : > { %v2066_v17 = vadd.f32 %v2065_v26, %v2017_v35  ;;  %v2019_v46 = vpop.f32.mrf.mxu1  ;;  %v1971_v41 = vadd.f32 %v1970_v50, %v4965_v40  ;;  %v3615_v40 = vld [vmem:[%s5192_s5 + $0x20] sm:$0xff] }
 0x24c   : > { %2585 = vmatpush.bf16.msra.mxu2 %v3615_v40 }
 0x24d   : > { %v2109_v13 = vmax.f32 %v2066_v17, 0.0  ;;  %2410 = vmatmul.bf16.gmra.mxu0 %v4967_v34  ;;  %v2020_v52 = vadd.f32 %v2019_v46, %v1971_v41  ;;  %v1936_v25 = vpop.f32.mrf.mxu3 }
 0x24f   : > { %v2151_v33 = vpack.c.bf16 %v2109_v13, %v2106_v3 }
 0x251   : > { %3406 = vmatmul.msk.bf16.gmra.mxu1 %vm2318_vm3, %v2151_v33 }
 0x252   : > { %v2068_v27 = vpop.f32.mrf.mxu2  ;;  %v1972_v5 = vpop.f32.mrf.mxu0 }
 0x253   : > { %v2021_v57 = vpop.f32.mrf.mxu1  ;;  %v1973_v59 = vadd.f32 %v1972_v5, %v4971_v16  ;;  %v2069_v53 = vadd.f32 %v2068_v27, %v2020_v52  ;;  %v1890_v5 = vadd.f32 %v5021_v20, %v4922_v48 }
 0x255   : > { %v2022_v7 = vadd.f32 %v2021_v57, %v1973_v59  ;;  %v2112_v18 = vmax.f32 %v2069_v53, 0.0  ;;  %v1938_v38 = vpop.f32.mrf.mxu3  ;;  %v1937_v59 = vadd.f32 %v1936_v25, %v1888_v12  ;;  %v1893_v25 = vadd.f32 %v5034_v22, %v4922_v48 }
 0x256   : > { %v1939_v53 = vadd.f32 %v1938_v38, %v1890_v5 }
 0x25a   : > { %v2070_v34 = vpop.f32.mrf.mxu2  ;;  %v1975_v49 = vpop.f32.mrf.mxu0 }
 0x25b   : > { %v2071_v2 = vadd.f32 %v2070_v34, %v2022_v7  ;;  %v2024_v42 = vpop.f32.mrf.mxu1  ;;  %v1976_v10 = vadd.f32 %v1975_v49, %v4986_v11  ;;  %v1885_v11 = vadd.f32 %v5005_v24, %v4922_v48 }
 0x25d   : > { %v2115_v55 = vmax.f32 %v2071_v2, 0.0  ;;  %2415 = vmatmul.bf16.gmra.mxu0 %v4988_v62  ;;  %v2025_v44 = vadd.f32 %v2024_v42, %v1976_v10  ;;  %v1941_v31 = vpop.f32.mrf.mxu3  ;;  %v1934_v21 = vadd.f32 %v1933_v15, %v1885_v11  ;;  %v3613_v15 = vld [vmem:[%s5192_s5 + $0x10] sm:$0xff] }
 0x25e   : > { %v1942_v38 = vadd.f32 %v1941_v31, %v1893_v25 }
 0x25f   : > { %v2154_v0 = vpack.c.bf16 %v2115_v55, %v2112_v18 }
 0x261   : > { %3407 = vmatmul.msk.bf16.gmra.mxu1 %vm2318_vm3, %v2154_v0 }
 0x262   : > { %v2073_v16 = vpop.f32.mrf.mxu2  ;;  %v1977_v43 = vpop.f32.mrf.mxu0 }
 0x263   : > { %v2026_v45 = vpop.f32.mrf.mxu1  ;;  %v1978_v37 = vadd.f32 %v1977_v43, %v4992_v36  ;;  %v2074_v9 = vadd.f32 %v2073_v16, %v2025_v44  ;;  %v3614_v36 = vld [vmem:[%s5192_s5 + $0x18] sm:$0xff]  ;;  %v1895_v43 = vadd.f32 %v5037_v4, %v4922_v48 }
 0x264   : > { %2586 = vmatpush.bf16.msra.mxu2 %v3614_v36  ;;  %v1898_v36 = vadd.f32 %v5047_v1, %v4922_v48 }
 0x265   : > { %v2027_v30 = vadd.f32 %v2026_v45, %v1978_v37  ;;  %v2118_v32 = vmax.f32 %v2074_v9, 0.0  ;;  %v1943_v8 = vpop.f32.mrf.mxu3  ;;  %v3612_v37 = vld [vmem:[%s5192_s5 + $0x8] sm:$0xff] }
 0x268   : > { %2587 = vmatpush.bf16.msra.mxu2 %v3613_v15 }
 0x26a   : > { %v2075_v62 = vpop.f32.mrf.mxu2  ;;  %v1980_v58 = vpop.f32.mrf.mxu0 }
 0x26b   : > { %v2076_v61 = vadd.f32 %v2075_v62, %v2027_v30  ;;  %v2029_v47 = vpop.f32.mrf.mxu1  ;;  %v1981_v56 = vadd.f32 %v1980_v58, %v1932_v63  ;;  %v1944_v30 = vadd.f32 %v1943_v8, %v1895_v43 }
 0x26c   : > { %2588 = vmatpush.bf16.msra.mxu2 %v3612_v37 }
 0x26d   : > { %v2121_v23 = vmax.f32 %v2076_v61, 0.0  ;;  %2420 = vmatmul.bf16.gmra.mxu0 %v5007_v39  ;;  %v2030_v39 = vadd.f32 %v2029_v47, %v1981_v56  ;;  %v1946_v49 = vpop.f32.mrf.mxu3 }
 0x26f   : > { %v2157_v14 = vpack.c.bf16 %v2121_v23, %v2118_v32 }
 0x271   : > { %3408 = vmatmul.msk.bf16.gmra.mxu1 %vm2318_vm3, %v2157_v14  ;;  %v3611_v14 = vld [vmem:[%s5192_s5] sm:$0xff] }
 0x272   : > { %v2078_v54 = vpop.f32.mrf.mxu2  ;;  %v1982_v35 = vpop.f32.mrf.mxu0  ;;  %2589 = vmatpush.bf16.msra.mxu2 %v3611_v14 }
 0x273   : > { %v2031_v26 = vpop.f32.mrf.mxu1  ;;  %v1983_v17 = vadd.f32 %v1982_v35, %v1934_v21  ;;  %v2079_v50 = vadd.f32 %v2078_v54, %v2030_v39  ;;  %v1900_v21 = vadd.f32 %v5050_v29, %v4922_v48  ;;  %v1947_v35 = vadd.f32 %v1946_v49, %v1898_v36 }
 0x275   : > { %v2032_v46 = vadd.f32 %v2031_v26, %v1983_v17  ;;  %v2124_v27 = vmax.f32 %v2079_v50, 0.0  ;;  %v1948_v44 = vpop.f32.mrf.mxu3 }
 0x276   : > { %v1949_v17 = vadd.f32 %v1948_v44, %v1900_v21 }
 0x27a   : > { %v2080_v24 = vpop.f32.mrf.mxu2  ;;  %v1985_v13 = vpop.f32.mrf.mxu0 }
 0x27b   : > { %v2081_v3 = vadd.f32 %v2080_v24, %v2032_v46  ;;  %v2034_v33 = vpop.f32.mrf.mxu1  ;;  %v1986_v7 = vadd.f32 %v1985_v13, %v1937_v59  ;;  %v5121_v59 = vld [vmem:[%s5191_s4] ss:$0 sm:$0xff] }
 0x27d   : > { %v2127_v41 = vmax.f32 %v2081_v3, 0.0  ;;  %2425 = vmatmul.bf16.gmra.mxu0 %v5026_v19  ;;  %v2035_v19 = vadd.f32 %v2034_v33, %v1986_v7  ;;  %v2352_v4 = vpop.f32.mrf.mxu3 }
 0x27e   : > { %v2353_v7 = vadd.f32 %v5121_v59, %v2352_v4  ;;  %v3624_v4 = vld [vmem:[%s5194_s7 + $0x28] sm:$0xff] }
 0x27f   : > { %v2160_v57 = vpack.c.bf16 %v2127_v41, %v2124_v27 }
 0x281   : > { %3409 = vmatmul.msk.bf16.gmra.mxu1 %vm2318_vm3, %v2160_v57 }
 0x282   : > { %v2083_v52 = vpop.f32.mrf.mxu2  ;;  %v1987_v6 = vpop.f32.mrf.mxu0 }
 0x283   : > { %v2036_v34 = vpop.f32.mrf.mxu1  ;;  %v1988_v2 = vadd.f32 %v1987_v6, %v1939_v53  ;;  %v2084_v42 = vadd.f32 %v2083_v52, %v2035_v19  ;;  %v3626_v52 = vld [vmem:[%s5194_s7 + $0x38] sm:$0xff] }
 0x284   : > { %2707 = vmatpush.bf16.msra.mxu3 %v3626_v52 }
 0x285   : > { %v2037_v18 = vadd.f32 %v2036_v34, %v1988_v2  ;;  %v2130_v16 = vmax.f32 %v2084_v42, 0.0  ;;  %v2354_v46 = vpop.f32.mrf.mxu3 }
 0x286   : > { %v2355_v34 = vadd.f32 %v5121_v59, %v2354_v46  ;;  %v3623_v46 = vld [vmem:[%s5194_s7 + $0x20] sm:$0xff] }
 0x28a   : > { %v2085_v20 = vpop.f32.mrf.mxu2  ;;  %v1990_v0 = vpop.f32.mrf.mxu0 }
 0x28b   : > { %v2086_v55 = vadd.f32 %v2085_v20, %v2037_v18  ;;  %v2039_v40 = vpop.f32.mrf.mxu1  ;;  %v1991_v22 = vadd.f32 %v1990_v0, %v1942_v38 }
 0x28d   : > { %v2133_v10 = vmax.f32 %v2086_v55, 0.0  ;;  %2430 = vmatmul.bf16.gmra.mxu0 %v5039_v60  ;;  %v2040_v60 = vadd.f32 %v2039_v40, %v1991_v22  ;;  %v2357_v48 = vpop.f32.mrf.mxu3 }
 0x28f   : > { %v2163_v45 = vpack.c.bf16 %v2133_v10, %v2130_v16  ;;  %v3625_v10 = vld [vmem:[%s5194_s7 + $0x30] sm:$0xff] }
 0x290   : > { %2708 = vmatpush.bf16.msra.mxu3 %v3625_v10 }
 0x291   : > { %3410 = vmatmul.msk.bf16.gmra.mxu1 %vm2318_vm3, %v2163_v45  ;;  %v2358_v45 = vadd.f32 %v5121_v59, %v2357_v48 }
 0x292   : > { %v2088_v9 = vpop.f32.mrf.mxu2  ;;  %v1992_v62 = vpop.f32.mrf.mxu0 }
 0x293   : > { %v2041_v61 = vpop.f32.mrf.mxu1  ;;  %v1993_v58 = vadd.f32 %v1992_v62, %v1944_v30  ;;  %v2089_v47 = vadd.f32 %v2088_v9, %v2040_v60 }
 0x294   : > { %2709 = vmatpush.bf16.msra.mxu3 %v3624_v4 }
 0x295   : > { %v2042_v51 = vadd.f32 %v2041_v61, %v1993_v58  ;;  %v2136_v63 = vmax.f32 %v2089_v47, 0.0  ;;  %v2359_v57 = vpop.f32.mrf.mxu3 }
 0x296   : > { %v2360_v37 = vadd.f32 %v5121_v59, %v2359_v57  ;;  %v3622_v57 = vld [vmem:[%s5194_s7 + $0x18] sm:$0xff] }
 0x298   : > { %2710 = vmatpush.bf16.msra.mxu3 %v3623_v46 }
 0x29a   : > { %v2090_v32 = vpop.f32.mrf.mxu2  ;;  %v1995_v11 = vpop.f32.mrf.mxu0 }
 0x29b   : > { %v2091_v23 = vadd.f32 %v2090_v32, %v2042_v51  ;;  %v2044_v54 = vpop.f32.mrf.mxu1  ;;  %v1996_v39 = vadd.f32 %v1995_v11, %v1947_v35 }
 0x29c   : > { %2711 = vmatpush.bf16.msra.mxu3 %v3622_v57 }
 0x29d   : > { %v2139_v31 = vmax.f32 %v2091_v23, 0.0  ;;  %2435 = vmatmul.bf16.gmra.mxu0 %v5052_v28  ;;  %v2045_v1 = vadd.f32 %v2044_v54, %v1996_v39  ;;  %v2362_v6 = vpop.f32.mrf.mxu3 }
 0x29e   : > { %v2363_v11 = vadd.f32 %v5121_v59, %v2362_v6 }
 0x29f   : > { %v2166_v56 = vpack.c.bf16 %v2139_v31, %v2136_v63 }
 0x2a1   : > { %3411 = vmatmul.msk.bf16.gmra.mxu1 %vm2318_vm3, %v2166_v56 }
 0x2a2   : > { %v2093_v26 = vpop.f32.mrf.mxu2  ;;  %v1997_v50 = vpop.f32.mrf.mxu0 }
 0x2a3   : > { %v1998_v24 = vadd.f32 %v1997_v50, %v1949_v17  ;;  %v2046_v3 = vpop.f32.mrf.mxu1  ;;  %v2094_v13 = vadd.f32 %v2093_v26, %v2045_v1 }
 0x2a5   : > { %v2047_v33 = vadd.f32 %v2046_v3, %v1998_v24  ;;  %v2142_v27 = vmax.f32 %v2094_v13, 0.0  ;;  %v2364_v16 = vpop.f32.mrf.mxu3 }
 0x2a6   : > { %v2365_v14 = vadd.f32 %v5121_v59, %v2364_v16 }
 0x2aa   : > { %v2095_v8 = vpop.f32.mrf.mxu2  ;;  %v2401_v12 = vpop.f32.mrf.mxu0 }
 0x2ab   : > { %v2096_v28 = vadd.f32 %v2095_v8, %v2047_v33  ;;  %v2402_v2 = vadd.f32 %v2401_v12, %v2353_v7 }
 0x2ad   : > { %v2145_v41 = vmax.f32 %v2096_v28, 0.0  ;;  %v2367_v22 = vpop.f32.mrf.mxu3 }
 0x2ae   : > { %v2368_v1 = vadd.f32 %v5121_v59, %v2367_v22 }
 0x2af   : > { %v2169_v29 = vpack.c.bf16 %v2145_v41, %v2142_v27 }
 0x2b1   : > { %3412 = vmatmul.msk.bf16.gmra.mxu1 %vm2318_vm3, %v2169_v29 }
 0x2b2   : > { %v2403_v5 = vpop.f32.mrf.mxu0 }
 0x2b3   : > { %v2404_v19 = vadd.f32 %v2403_v5, %v2355_v34 }
 0x2b5   : > { %v2369_v23 = vpop.f32.mrf.mxu3 }
 0x2b6   : > { %v2370_v3 = vadd.f32 %v5121_v59, %v2369_v23 }
 0x2ba   : > { %v2406_v15 = vpop.f32.mrf.mxu0 }
 0x2bb   : > { %v2407_v44 = vadd.f32 %v2406_v15, %v2358_v45 }
 0x2bd   : > { %v2372_v17 = vpop.f32.mrf.mxu3 }
 0x2be   : > { %v2450_v53 = vpop.f32.mrf.mxu1  ;;  %v2373_v7 = vadd.f32 %v5121_v59, %v2372_v17 }
 0x2bf   : > { %v2451_v42 = vadd.f32 %v2450_v53, %v2402_v2 }
 0x2c1   : > { %v2490_v55 = vmax.f32 %v2451_v42, 0.0 }
 0x2c2   : > { %v2408_v49 = vpop.f32.mrf.mxu0 }
 0x2c3   : > { %v2409_v9 = vadd.f32 %v2408_v49, %v2360_v37 }
 0x2c5   : > { %v2374_v33 = vpop.f32.mrf.mxu3 }
 0x2c6   : > { %v2452_v18 = vpop.f32.mrf.mxu1  ;;  %v2375_v6 = vadd.f32 %v5121_v59, %v2374_v33 }
 0x2c7   : > { %v2453_v20 = vadd.f32 %v2452_v18, %v2404_v19 }
 0x2c9   : > { %v2491_v0 = vmax.f32 %v2453_v20, 0.0 }
 0x2ca   : > { %v2411_v25 = vpop.f32.mrf.mxu0 }
 0x2cb   : > { %v2506_v40 = vpack.c.bf16 %v2491_v0, %v2490_v55  ;;  %v2412_v36 = vadd.f32 %v2411_v25, %v2363_v11  ;;  %v3621_v25 = vld [vmem:[%s5194_s7 + $0x10] sm:$0xff] }
 0x2cc   : > { %2712 = vmatpush.bf16.msra.mxu3 %v3621_v25 }
 0x2cd   : > { %2590 = vmatmul.bf16.vlgmr.msra.gmra.mxu2 %v2506_v40  ;;  %v2377_v15 = vpop.f32.mrf.mxu3 }
 0x2ce   : > { %v2455_v43 = vpop.f32.mrf.mxu1  ;;  %v2378_v10 = vadd.f32 %v5121_v59, %v2377_v15 }
 0x2cf   : > { %v2456_v30 = vadd.f32 %v2455_v43, %v2407_v44 }
 0x2d1   : > { %v2492_v58 = vmax.f32 %v2456_v30, 0.0 }
 0x2d2   : > { %v2413_v38 = vpop.f32.mrf.mxu0 }
 0x2d3   : > { %v2414_v31 = vadd.f32 %v2413_v38, %v2365_v14 }
 0x2d5   : > { %v2379_v18 = vpop.f32.mrf.mxu3 }
 0x2d6   : > { %v2457_v62 = vpop.f32.mrf.mxu1  ;;  %v2380_v45 = vadd.f32 %v5121_v59, %v2379_v18 }
 0x2d7   : > { %v2458_v61 = vadd.f32 %v2457_v62, %v2409_v9 }
 0x2d9   : > { %v2493_v60 = vmax.f32 %v2458_v61, 0.0 }
 0x2da   : > { %v2416_v51 = vpop.f32.mrf.mxu0 }
 0x2db   : > { %v2507_v47 = vpack.c.bf16 %v2493_v60, %v2492_v58  ;;  %v2417_v13 = vadd.f32 %v2416_v51, %v2368_v1 }
 0x2dd   : > { %2595 = vmatmul.bf16.gmra.mxu2 %v2507_v47  ;;  %v2382_v43 = vpop.f32.mrf.mxu3  ;;  %v3620_v47 = vld [vmem:[%s5194_s7 + $0x8] sm:$0xff] }
 0x2de   : > { %v2460_v32 = vpop.f32.mrf.mxu1  ;;  %2713 = vmatpush.bf16.msra.mxu3 %v3620_v47  ;;  %v2383_v23 = vadd.f32 %v5121_v59, %v2382_v43 }
 0x2df   : > { %v2461_v54 = vadd.f32 %v2460_v32, %v2412_v36  ;;  %v3619_v32 = vld [vmem:[%s5194_s7] sm:$0xff] }
 0x2e1   : > { %v2494_v35 = vmax.f32 %v2461_v54, 0.0 }
 0x2e2   : > { %v2418_v63 = vpop.f32.mrf.mxu0  ;;  %2714 = vmatpush.bf16.msra.mxu3 %v3619_v32 }
 0x2e3   : > { %v2419_v8 = vadd.f32 %v2418_v63, %v2370_v3 }
 0x2e5   : > { %v2384_v60 = vpop.f32.mrf.mxu3 }
 0x2e6   : > { %v2462_v21 = vpop.f32.mrf.mxu1  ;;  %v2385_v11 = vadd.f32 %v5121_v59, %v2384_v60 }
 0x2e7   : > { %v2463_v56 = vadd.f32 %v2462_v21, %v2414_v31 }
 0x2e9   : > { %v2495_v26 = vmax.f32 %v2463_v56, 0.0 }
 0x2ea   : > { %v2421_v50 = vpop.f32.mrf.mxu0 }
 0x2eb   : > { %v2508_v39 = vpack.c.bf16 %v2495_v26, %v2494_v35  ;;  %v2422_v34 = vadd.f32 %v2421_v50, %v2373_v7 }
 0x2ed   : > { %2600 = vmatmul.bf16.gmra.mxu2 %v2508_v39  ;;  %v2387_v31 = vpop.f32.mrf.mxu3 }
 0x2ee   : > { %v2465_v24 = vpop.f32.mrf.mxu1  ;;  %v2388_v46 = vadd.f32 %v5121_v59, %v2387_v31 }
 0x2ef   : > { %v2466_v28 = vadd.f32 %v2465_v24, %v2417_v13 }
 0x2f1   : > { %v2496_v48 = vmax.f32 %v2466_v28, 0.0 }
 0x2f2   : > { %v2423_v12 = vpop.f32.mrf.mxu0 }
 0x2f3   : > { %v2424_v2 = vadd.f32 %v2423_v12, %v2375_v6 }
 0x2f5   : > { %v2389_v50 = vpop.f32.mrf.mxu3 }
 0x2f6   : > { %v2467_v27 = vpop.f32.mrf.mxu1  ;;  %v2390_v1 = vadd.f32 %v5121_v59, %v2389_v50 }
 0x2f7   : > { %v2468_v41 = vadd.f32 %v2467_v27, %v2419_v8 }
 0x2f9   : > { %v2497_v29 = vmax.f32 %v2468_v41, 0.0 }
 0x2fa   : > { %v2426_v53 = vpop.f32.mrf.mxu0 }
 0x2fb   : > { %v2509_v5 = vpack.c.bf16 %v2497_v29, %v2496_v48  ;;  %v2427_v37 = vadd.f32 %v2426_v53, %v2378_v10  ;;  %v3685_v29 = vld [vmem:[%s5193_s6] ss:$0 sm:$0xff] }
 0x2fd   : > { %2605 = vmatmul.bf16.gmra.mxu2 %v2509_v5 }
 0x2fe   : > { %v2470_v52 = vpop.f32.mrf.mxu1 }
 0x2ff   : > { %v2471_v49 = vadd.f32 %v2470_v52, %v2422_v34 }
 0x301   : > { %v2498_v20 = vmax.f32 %v2471_v49, 0.0 }
 0x302   : > { %v2428_v0 = vpop.f32.mrf.mxu0 }
 0x303   : > { %v2429_v38 = vadd.f32 %v2428_v0, %v2380_v45 }
 0x306   : > { %v2472_v19 = vpop.f32.mrf.mxu1 }
 0x307   : > { %v2473_v42 = vadd.f32 %v2472_v19, %v2424_v2 }
 0x309   : > { %v2499_v55 = vmax.f32 %v2473_v42, 0.0 }
 0x30a   : > { %v2431_v44 = vpop.f32.mrf.mxu0 }
 0x30b   : > { %v2510_v40 = vpack.c.bf16 %v2499_v55, %v2498_v20  ;;  %v2432_v14 = vadd.f32 %v2431_v44, %v2383_v23 }
 0x30d   : > { %2610 = vmatmul.bf16.gmra.mxu2 %v2510_v40 }
 0x30e   : > { %v2475_v16 = vpop.f32.mrf.mxu1 }
 0x30f   : > { %v2476_v9 = vadd.f32 %v2475_v16, %v2427_v37 }
 0x311   : > { %v2500_v62 = vmax.f32 %v2476_v9, 0.0 }
 0x312   : > { %v2433_v51 = vpop.f32.mrf.mxu0 }
 0x313   : > { %v2434_v36 = vadd.f32 %v2433_v51, %v2385_v11 }
 0x316   : > { %v2477_v30 = vpop.f32.mrf.mxu1 }
 0x317   : > { %v2478_v22 = vadd.f32 %v2477_v30, %v2429_v38 }
 0x319   : > { %v2501_v61 = vmax.f32 %v2478_v22, 0.0 }
 0x31a   : > { %v2436_v56 = vpop.f32.mrf.mxu0 }
 0x31b   : > { %v2511_v58 = vpack.c.bf16 %v2501_v61, %v2500_v62  ;;  %v2437_v3 = vadd.f32 %v2436_v56, %v2388_v46 }
 0x31d   : > { %2615 = vmatmul.bf16.gmra.mxu2 %v2511_v58 }
 0x31e   : > { %v2480_v4 = vpop.f32.mrf.mxu1 }
 0x31f   : > { %v2481_v63 = vadd.f32 %v2480_v4, %v2432_v14 }
 0x321   : > { %v2502_v35 = vmax.f32 %v2481_v63, 0.0 }
 0x322   : > { %v2438_v24 = vpop.f32.mrf.mxu0 }
 0x323   : > { %v2439_v13 = vadd.f32 %v2438_v24, %v2390_v1 }
 0x326   : > { %v2482_v54 = vpop.f32.mrf.mxu1 }
 0x327   : > { %v2483_v21 = vadd.f32 %v2482_v54, %v2434_v36  ;;  %v3686_v36 = vld [vmem:[%s5195_s8] ss:$0 sm:$0xff] }
 0x329   : > { %v2503_v26 = vmax.f32 %v2483_v21, 0.0 }
 0x32b   : > { %v2512_v17 = vpack.c.bf16 %v2503_v26, %v2502_v35 }
 0x32d   : > { %2620 = vmatmul.bf16.gmra.mxu2 %v2512_v17 }
 0x32e   : > { %v2485_v39 = vpop.f32.mrf.mxu1 }
 0x32f   : > { %v2486_v33 = vadd.f32 %v2485_v39, %v2437_v3 }
 0x331   : > { %v2504_v12 = vmax.f32 %v2486_v33, 0.0 }
 0x336   : > { %v2487_v8 = vpop.f32.mrf.mxu1 }
 0x337   : > { %v2488_v28 = vadd.f32 %v2487_v8, %v2439_v13 }
 0x339   : > { %v2505_v27 = vmax.f32 %v2488_v28, 0.0 }
 0x33b   : > { %v2513_v41 = vpack.c.bf16 %v2505_v27, %v2504_v12 }
 0x33d   : > { %2625 = vmatmul.bf16.gmra.mxu2 %v2513_v41 }
 0x350   : > { %v2591_v48 = vpop.f32.mrf.mxu2 }
 0x351   : > { %v2592_v57 = vadd.f32 %v3685_v29, %v2591_v48 }
 0x358   : > { %v2593_v5 = vpop.f32.mrf.mxu2 }
 0x359   : > { %v2594_v15 = vadd.f32 %v3685_v29, %v2593_v5 }
 0x35b   : > { %v2631_v52 = vpack.c.bf16 %v2594_v15, %v2592_v57 }
 0x35d   : > { %2715 = vmatmul.bf16.vlgmr.msra.gmra.mxu3 %v2631_v52 }
 0x360   : > { %v2596_v59 = vpop.f32.mrf.mxu2 }
 0x361   : > { %v2597_v7 = vadd.f32 %v3685_v29, %v2596_v59 }
 0x368   : > { %v2598_v53 = vpop.f32.mrf.mxu2 }
 0x369   : > { %v2599_v6 = vadd.f32 %v3685_v29, %v2598_v53 }
 0x36b   : > { %v2632_v34 = vpack.c.bf16 %v2599_v6, %v2597_v7 }
 0x36d   : > { %2720 = vmatmul.bf16.gmra.mxu3 %v2632_v34 }
 0x370   : > { %v2601_v2 = vpop.f32.mrf.mxu2 }
 0x371   : > { %v2602_v19 = vadd.f32 %v3685_v29, %v2601_v2 }
 0x378   : > { %v2603_v49 = vpop.f32.mrf.mxu2 }
 0x379   : > { %v2604_v42 = vadd.f32 %v3685_v29, %v2603_v49 }
 0x37b   : > { %v2633_v18 = vpack.c.bf16 %v2604_v42, %v2602_v19 }
 0x37d   : > { %2725 = vmatmul.bf16.gmra.mxu3 %v2633_v18 }
 0x380   : > { %v2606_v20 = vpop.f32.mrf.mxu2 }
 0x381   : > { %v2607_v0 = vadd.f32 %v3685_v29, %v2606_v20 }
 0x388   : > { %v2608_v55 = vpop.f32.mrf.mxu2 }
 0x389   : > { %v2609_v40 = vadd.f32 %v3685_v29, %v2608_v55 }
 0x38b   : > { %v2634_v25 = vpack.c.bf16 %v2609_v40, %v2607_v0 }
 0x38d   : > { %2730 = vmatmul.bf16.gmra.mxu3 %v2634_v25 }
 0x390   : > { %v2611_v16 = vpop.f32.mrf.mxu2 }
 0x391   : > { %v2612_v43 = vadd.f32 %v3685_v29, %v2611_v16 }
 0x398   : > { %v2613_v10 = vpop.f32.mrf.mxu2 }
 0x399   : > { %v2614_v45 = vadd.f32 %v3685_v29, %v2613_v10 }
 0x39b   : > { %v2635_v37 = vpack.c.bf16 %v2614_v45, %v2612_v43 }
 0x39d   : > { %2735 = vmatmul.bf16.gmra.mxu3 %v2635_v37 }
 0x3a0   : > { %v2616_v44 = vpop.f32.mrf.mxu2 }
 0x3a1   : > { %v2617_v9 = vadd.f32 %v3685_v29, %v2616_v44 }
 0x3a8   : > { %v2618_v38 = vpop.f32.mrf.mxu2 }
 0x3a9   : > { %v2619_v30 = vadd.f32 %v3685_v29, %v2618_v38 }
 0x3ab   : > { %v2636_v22 = vpack.c.bf16 %v2619_v30, %v2617_v9 }
 0x3ad   : > { %2740 = vmatmul.bf16.gmra.mxu3 %v2636_v22 }
 0x3b0   : > { %v2621_v62 = vpop.f32.mrf.mxu2 }
 0x3b1   : > { %v2622_v58 = vadd.f32 %v3685_v29, %v2621_v62 }
 0x3b8   : > { %v2623_v61 = vpop.f32.mrf.mxu2 }
 0x3b9   : > { %v2624_v60 = vadd.f32 %v3685_v29, %v2623_v61 }
 0x3bb   : > { %v2637_v47 = vpack.c.bf16 %v2624_v60, %v2622_v58 }
 0x3bd   : > { %2745 = vmatmul.bf16.gmra.mxu3 %v2637_v47 }
 0x3c0   : > { %v2626_v51 = vpop.f32.mrf.mxu2 }
 0x3c1   : > { %v2627_v32 = vadd.f32 %v3685_v29, %v2626_v51 }
 0x3c8   : > { %v2628_v4 = vpop.f32.mrf.mxu2 }
 0x3c9   : > { %v2629_v23 = vadd.f32 %v3685_v29, %v2628_v4 }
 0x3cb   : > { %v2638_v11 = vpack.c.bf16 %v2629_v23, %v2627_v32 }
 0x3cd   : > { %2750 = vmatmul.bf16.gmra.mxu3 %v2638_v11 }
 0x3e0   : > { %v2716_v14 = vpop.f32.mrf.mxu3 }
 0x3e1   : > { %v2717_v31 = vadd.f32 %v3686_v36, %v2716_v14 }
 0x3e8   : > { %v2718_v63 = vpop.f32.mrf.mxu3 }
 0x3e9   : > { %v2719_v54 = vadd.f32 %v3686_v36, %v2718_v63 }
 0x3eb   : > { %v3630_v21 = vpack.c.bf16 %v2719_v54, %v2717_v31 }
 0x3ed   : > { %3631 = vst [vmem:[%s5174_s15] sm:$0xff] %v3630_v21  }
 0x3f0   : > { %v2721_v56 = vpop.f32.mrf.mxu3 }
 0x3f1   : > { %v2722_v26 = vadd.f32 %v3686_v36, %v2721_v56 }
 0x3f8   : > { %v2723_v35 = vpop.f32.mrf.mxu3 }
 0x3f9   : > { %v2724_v17 = vadd.f32 %v3686_v36, %v2723_v35 }
 0x3fb   : > { %v3635_v39 = vpack.c.bf16 %v2724_v17, %v2722_v26 }
 0x3fd   : > { %3667 = vst [vmem:[%s5174_s15 + $0x8] sm:$0xff] %v3635_v39  }
 0x400   : > { %v2726_v50 = vpop.f32.mrf.mxu3 }
 0x401   : > { %v2727_v24 = vadd.f32 %v3686_v36, %v2726_v50 }
 0x408   : > { %v2728_v46 = vpop.f32.mrf.mxu3 }
 0x409   : > { %v2729_v1 = vadd.f32 %v3686_v36, %v2728_v46 }
 0x40b   : > { %v3640_v3 = vpack.c.bf16 %v2729_v1, %v2727_v24 }
 0x40d   : > { %3668 = vst [vmem:[%s5174_s15 + $0x10] sm:$0xff] %v3640_v3  }
 0x410   : > { %v2731_v13 = vpop.f32.mrf.mxu3 }
 0x411   : > { %v2732_v8 = vadd.f32 %v3686_v36, %v2731_v13 }
 0x418   : > { %v2733_v33 = vpop.f32.mrf.mxu3 }
 0x419   : > { %v2734_v28 = vadd.f32 %v3686_v36, %v2733_v33 }
 0x41b   : > { %v3645_v12 = vpack.c.bf16 %v2734_v28, %v2732_v8 }
 0x41d   : > { %3669 = vst [vmem:[%s5174_s15 + $0x18] sm:$0xff] %v3645_v12  }
 0x420   : > { %v2736_v27 = vpop.f32.mrf.mxu3 }
 0x421   : > { %v2737_v48 = vadd.f32 %v3686_v36, %v2736_v27 }
 0x428   : > { %v2738_v41 = vpop.f32.mrf.mxu3 }
 0x429   : > { %v2739_v29 = vadd.f32 %v3686_v36, %v2738_v41 }
 0x42b   : > { %v3650_v5 = vpack.c.bf16 %v2739_v29, %v2737_v48 }
 0x42d   : > { %3670 = vst [vmem:[%s5174_s15 + $0x20] sm:$0xff] %v3650_v5  }
 0x430   : > { %v2741_v57 = vpop.f32.mrf.mxu3 }
 0x431   : > { %v2742_v52 = vadd.f32 %v3686_v36, %v2741_v57 }
 0x438   : > { %v2743_v15 = vpop.f32.mrf.mxu3 }
 0x439   : > { %v2744_v59 = vadd.f32 %v3686_v36, %v2743_v15 }
 0x43b   : > { %v3655_v53 = vpack.c.bf16 %v2744_v59, %v2742_v52 }
 0x43d   : > { %3671 = vst [vmem:[%s5174_s15 + $0x28] sm:$0xff] %v3655_v53  }
 0x440   : > { %v2746_v7 = vpop.f32.mrf.mxu3 }
 0x441   : > { %v2747_v34 = vadd.f32 %v3686_v36, %v2746_v7 }
 0x448   : > { %v2748_v6 = vpop.f32.mrf.mxu3 }
 0x449   : > { %v2749_v2 = vadd.f32 %v3686_v36, %v2748_v6 }
 0x44b   : > { %v3660_v49 = vpack.c.bf16 %v2749_v2, %v2747_v34 }
 0x44d   : > { %3672 = vst [vmem:[%s5174_s15 + $0x30] sm:$0xff] %v3660_v49  }
 0x450   : > { %v2751_v19 = vpop.f32.mrf.mxu3 }
 0x451   : > { %v2752_v18 = vadd.f32 %v3686_v36, %v2751_v19 }
 0x458   : > { %v2753_v42 = vpop.f32.mrf.mxu3 }
 0x459   : > { %v2754_v20 = vadd.f32 %v3686_v36, %v2753_v42 }
 0x45b   : > { %v3665_v55 = vpack.c.bf16 %v2754_v20, %v2752_v18 }
 0x45d   : > { %3673 = vst [vmem:[%s5174_s15 + $0x38] sm:$0xff] %v3665_v55  }
 0x45e PF: > { %s19_s30 = sadd.s32 1, %s3694_s30  }
 0x45f   : > { %p16_p5 = scmp.ge.s32.totalorder %s19_s30, 4  }
 0x461   :  { %18 = sbr.rel (!%p16_p5) target bundleno = 1 (0x1), region = 86 }

</bundles_post_ra>
